<compile_context>
chip_gen: v5e
topology: v5e:2x2
jax: 0.10.0
libtpu: 0.0.40
codegen_flags: <defaults>
</compile_context>

<pallas_src>
import math
import jax
import jax.numpy as jnp
from jax.experimental import pallas as pl
from jax.experimental.pallas import tpu as pltpu

EPS = 1e-6


def _make_kernel(B, Lq, Lk, D, H):
    dk = D // H
    Nq, Nk = B * Lq, B * Lk

    def split_heads(t2, L):
        # (B*L, D) -> (B*H, L, dk); one relayout on the XLU slot.
        t = t2.reshape(B, L, H, dk)
        t = jnp.transpose(t, (0, 2, 1, 3))
        return t.reshape(B * H, L, dk)

    def kernel(x_ref, f_ref,
               wq_ref, wk_ref, wv_ref, wo_ref,
               bq_ref, bk_ref, bv_ref, bo_ref,
               g_ref, beta_ref,
               o_ref):
        x = x_ref[...]          # (Nq, D) f32, rows = flattened (batch, seq)
        f = f_ref[...]          # (Nk, D) f32

        # ---- LayerNorm(x): a*(x-mean)/(std+eps)+b, unbiased std (ddof=1), exact ----
        mean = jnp.mean(x, axis=-1, keepdims=True)
        xc = x - mean
        var = jnp.sum(xc * xc, axis=-1, keepdims=True) * (1.0 / (D - 1))
        std = jnp.sqrt(var)
        xn = g_ref[...] * (xc / (std + EPS)) + beta_ref[...]

        # ---- Q/K/V projections: full-width (N,D)@(D,D) matmuls, f32 activations ----
        # Weights arrive bf16 (DMA/VMEM saving) and are upconverted once.
        wq = wq_ref[...].astype(jnp.float32)
        wk = wk_ref[...].astype(jnp.float32)
        wv = wv_ref[...].astype(jnp.float32)
        q2 = jnp.dot(xn, wq, preferred_element_type=jnp.float32) + bq_ref[...]  # scale pre-folded
        k2 = jnp.dot(f, wk, preferred_element_type=jnp.float32) + bk_ref[...]
        v2 = jnp.dot(f, wv, preferred_element_type=jnp.float32) + bv_ref[...]

        # ---- split heads once, then ONE batched attention pass over all B*H heads ----
        q = split_heads(q2, Lq)                    # (B*H, Lq, dk)
        k = split_heads(k2, Lk)                    # (B*H, Lk, dk)
        v = split_heads(v2, Lk)                    # (B*H, Lk, dk)

        s = jnp.einsum('bqd,bkd->bqk', q, k,
                       preferred_element_type=jnp.float32)          # (B*H, Lq, Lk)
        s = s - jnp.max(s, axis=-1, keepdims=True)
        p = jnp.exp(s)
        p = p * pl.reciprocal(jnp.sum(p, axis=-1, keepdims=True), approx=True)

        ctx = jnp.einsum('bqk,bkd->bqd', p, v,
                         preferred_element_type=jnp.float32)         # (B*H, Lq, dk)

        # ---- merge heads and fuse the output projection into one K=D contraction ----
        ctx2 = jnp.transpose(ctx.reshape(B, H, Lq, dk), (0, 2, 1, 3)).reshape(Nq, D)
        wo = wo_ref[...].astype(jnp.float32)
        o = jnp.dot(ctx2, wo, preferred_element_type=jnp.float32) + bo_ref[...]

        # pre-LN residual, single full-slab store
        o_ref[...] = x + o

    return kernel


def mha_ff_pallas(x, feats, params, h):
    B, Lq, D = x.shape
    _, Lk, _ = feats.shape
    dk = D // h
    scale = 1.0 / math.sqrt(dk)

    # Wrapper-side (plain XLA, free) prep:
    #  * flatten (batch, seq) rows so the kernel sees 2-D slabs,
    #  * fold 1/sqrt(dk) into Wq/bq,
    #  * store matmul weights as bf16 (activations stay f32 in-kernel).
    x2 = x.reshape(B * Lq, D)
    f2 = feats.reshape(B * Lk, D)

    wq = (params["wq"] * scale).astype(jnp.bfloat16)
    wk = params["wk"].astype(jnp.bfloat16)
    wv = params["wv"].astype(jnp.bfloat16)
    wo = params["wo"].astype(jnp.bfloat16)
    bq = params["bq"] * scale

    kernel = _make_kernel(B, Lq, Lk, D, h)
    vmem = pl.BlockSpec(memory_space=pltpu.MemorySpace.VMEM)

    out2 = pl.pallas_call(
        kernel,
        out_shape=jax.ShapeDtypeStruct((B * Lq, D), jnp.float32),
        in_specs=[vmem] * 12,
        out_specs=vmem,
    )(x2, f2, wq, wk, wv, wo, bq, params["bk"], params["bv"], params["bo"],
      params["gamma"], params["beta"])

    return out2.reshape(B, Lq, D)


def mha_ff_reference(x, feats, params, h):
    """Pure-JAX f32 reference mirroring the PyTorch forward, for validation."""
    B, Lq, D = x.shape
    dk = D // h
    mean = jnp.mean(x, axis=-1, keepdims=True)
    var = jnp.sum((x - mean) ** 2, axis=-1, keepdims=True) / (D - 1)
    std = jnp.sqrt(var)
    xn = params["gamma"] * (x - mean) / (std + EPS) + params["beta"]

    q = xn @ params["wq"] + params["bq"]
    k = feats @ params["wk"] + params["bk"]
    v = feats @ params["wv"] + params["bv"]

    def split(t):  # (B, L, D) -> (B, h, L, dk)
        return t.reshape(t.shape[0], t.shape[1], h, dk).transpose(0, 2, 1, 3)

    qh, kh, vh = split(q), split(k), split(v)
    s = jnp.einsum("bhqd,bhkd->bhqk", qh, kh) / math.sqrt(dk)
    p = jax.nn.softmax(s, axis=-1)
    o = jnp.einsum("bhqk,bhkd->bhqd", p, vh)
    o = o.transpose(0, 2, 1, 3).reshape(B, Lq, D)
    o = o @ params["wo"] + params["bo"]
    return x + o


def init_params(key, d_model):
    ks = jax.random.split(key, 8)
    s = 1.0 / math.sqrt(d_model)
    return {
        # Weights stored pre-transposed so y = x @ W + b.
        "wq": jax.random.uniform(ks[0], (d_model, d_model), jnp.float32, -s, s),
        "wk": jax.random.uniform(ks[1], (d_model, d_model), jnp.float32, -s, s),
        "wv": jax.random.uniform(ks[2], (d_model, d_model), jnp.float32, -s, s),
        "wo": jax.random.uniform(ks[3], (d_model, d_model), jnp.float32, -s, s),
        "bq": jax.random.uniform(ks[4], (1, d_model), jnp.float32, -s, s),
        "bk": jax.random.uniform(ks[5], (1, d_model), jnp.float32, -s, s),
        "bv": jax.random.uniform(ks[6], (1, d_model), jnp.float32, -s, s),
        "bo": jax.random.uniform(ks[7], (1, d_model), jnp.float32, -s, s),
        # LayerNorm params at PyTorch init values (ones / zeros).
        "gamma": jnp.ones((1, d_model), jnp.float32),
        "beta": jnp.zeros((1, d_model), jnp.float32),
    }


if __name__ == "__main__":
    B, Lq, Lk, d_model, h = 2, 8, 16, 32, 4
    # d_ff = 64  # unused by MHA_FF.forward
    key = jax.random.PRNGKey(0)
    kx, kf, kp = jax.random.split(key, 3)
    x = jax.random.normal(kx, (B, Lq, d_model), jnp.float32)
    feats = jax.random.normal(kf, (B, Lk, d_model), jnp.float32)
    params = init_params(kp, d_model)

    # TODO(synk): dropout is omitted (eval-mode identity); training-mode dropout not implemented.
    out = mha_ff_pallas(x, feats, params, h)
    out = jax.block_until_ready(out)

    ref = mha_ff_reference(x, feats, params, h)
    assert out.shape == (B, Lq, d_model)
    # Tolerance covers only bf16 weight storage (activations/LayerNorm/softmax are
    # f32 with an exact LayerNorm divide); typical error is ~1e-3.
    assert jnp.allclose(out, ref, atol=2e-2, rtol=2e-2), "Pallas output mismatch vs reference"
    print("KERNEL_OK")
</pallas_src>

<mosaic_0001>
module attributes {stable_mosaic.version = 11 : i64} {
  func.func @kernel(%arg0: memref<16x32xf32, #tpu.memory_space<vmem>>, %arg1: memref<32x32xf32, #tpu.memory_space<vmem>>, %arg2: memref<32x32xbf16, #tpu.memory_space<vmem>>, %arg3: memref<32x32xbf16, #tpu.memory_space<vmem>>, %arg4: memref<32x32xbf16, #tpu.memory_space<vmem>>, %arg5: memref<32x32xbf16, #tpu.memory_space<vmem>>, %arg6: memref<1x32xf32, #tpu.memory_space<vmem>>, %arg7: memref<1x32xf32, #tpu.memory_space<vmem>>, %arg8: memref<1x32xf32, #tpu.memory_space<vmem>>, %arg9: memref<1x32xf32, #tpu.memory_space<vmem>>, %arg10: memref<1x32xf32, #tpu.memory_space<vmem>>, %arg11: memref<1x32xf32, #tpu.memory_space<vmem>>, %arg12: memref<16x32xf32, #tpu.memory_space<vmem>>) attributes {dimension_semantics = [], scalar_prefetch = 0 : i64, scratch_operands = 0 : i64, tpu.core_type = #tpu.core_type<tc>} {
    %c0 = arith.constant 0 : index
    %c0_0 = arith.constant 0 : index
    %0 = vector.load %arg0[%c0, %c0_0] : memref<16x32xf32, #tpu.memory_space<vmem>>, vector<16x32xf32>
    %c0_1 = arith.constant 0 : index
    %c0_2 = arith.constant 0 : index
    %1 = vector.load %arg1[%c0_1, %c0_2] : memref<32x32xf32, #tpu.memory_space<vmem>>, vector<32x32xf32>
    %cst = arith.constant dense<0.000000e+00> : vector<16xf32>
    %2 = vector.multi_reduction <add>, %0, %cst [1] : vector<16x32xf32> to vector<16xf32>
    %3 = vector.shape_cast %2 : vector<16xf32> to vector<16x1xf32>
    %cst_3 = arith.constant 3.200000e+01 : f32
    %4 = vector.broadcast %cst_3 : f32 to vector<16x1xf32>
    %5 = arith.divf %3, %4 : vector<16x1xf32>
    %6 = vector.broadcast %5 : vector<16x1xf32> to vector<16x32xf32>
    %7 = arith.subf %0, %6 : vector<16x32xf32>
    %8 = arith.mulf %7, %7 : vector<16x32xf32>
    %cst_4 = arith.constant dense<0.000000e+00> : vector<16xf32>
    %9 = vector.multi_reduction <add>, %8, %cst_4 [1] : vector<16x32xf32> to vector<16xf32>
    %10 = vector.shape_cast %9 : vector<16xf32> to vector<16x1xf32>
    %cst_5 = arith.constant 0.0322580636 : f32
    %11 = vector.broadcast %cst_5 : f32 to vector<16x1xf32>
    %12 = arith.mulf %10, %11 : vector<16x1xf32>
    %13 = math.sqrt %12 : vector<16x1xf32>
    %c0_6 = arith.constant 0 : index
    %c0_7 = arith.constant 0 : index
    %14 = vector.load %arg10[%c0_6, %c0_7] : memref<1x32xf32, #tpu.memory_space<vmem>>, vector<1x32xf32>
    %cst_8 = arith.constant 9.99999997E-7 : f32
    %15 = vector.broadcast %cst_8 : f32 to vector<16x1xf32>
    %16 = arith.addf %13, %15 : vector<16x1xf32>
    %17 = vector.broadcast %16 : vector<16x1xf32> to vector<16x32xf32>
    %18 = arith.divf %7, %17 : vector<16x32xf32>
    %19 = vector.broadcast %14 : vector<1x32xf32> to vector<16x32xf32>
    %20 = arith.mulf %19, %18 : vector<16x32xf32>
    %c0_9 = arith.constant 0 : index
    %c0_10 = arith.constant 0 : index
    %21 = vector.load %arg11[%c0_9, %c0_10] : memref<1x32xf32, #tpu.memory_space<vmem>>, vector<1x32xf32>
    %22 = vector.broadcast %21 : vector<1x32xf32> to vector<16x32xf32>
    %23 = arith.addf %20, %22 : vector<16x32xf32>
    %c0_11 = arith.constant 0 : index
    %c0_12 = arith.constant 0 : index
    %24 = vector.load %arg2[%c0_11, %c0_12] : memref<32x32xbf16, #tpu.memory_space<vmem>>, vector<32x32xbf16>
    %25 = arith.extf %24 : vector<32x32xbf16> to vector<32x32xf32>
    %c0_13 = arith.constant 0 : index
    %c0_14 = arith.constant 0 : index
    %26 = vector.load %arg3[%c0_13, %c0_14] : memref<32x32xbf16, #tpu.memory_space<vmem>>, vector<32x32xbf16>
    %27 = arith.extf %26 : vector<32x32xbf16> to vector<32x32xf32>
    %c0_15 = arith.constant 0 : index
    %c0_16 = arith.constant 0 : index
    %28 = vector.load %arg4[%c0_15, %c0_16] : memref<32x32xbf16, #tpu.memory_space<vmem>>, vector<32x32xbf16>
    %29 = arith.extf %28 : vector<32x32xbf16> to vector<32x32xf32>
    %cst_17 = arith.constant dense<0.000000e+00> : vector<16x32xf32>
    %30 = tpu.matmul %23, %25, %cst_17 {dimension_numbers = #tpu.dot_dimension_numbers<[1], [0], [0], [1], [0, 0, 1, 1], [], []>} : vector<16x32xf32>, vector<32x32xf32>, vector<16x32xf32> -> vector<16x32xf32>
    %c0_18 = arith.constant 0 : index
    %c0_19 = arith.constant 0 : index
    %31 = vector.load %arg6[%c0_18, %c0_19] : memref<1x32xf32, #tpu.memory_space<vmem>>, vector<1x32xf32>
    %32 = vector.broadcast %31 : vector<1x32xf32> to vector<16x32xf32>
    %33 = arith.addf %30, %32 : vector<16x32xf32>
    %cst_20 = arith.constant dense<0.000000e+00> : vector<32x32xf32>
    %34 = tpu.matmul %1, %27, %cst_20 {dimension_numbers = #tpu.dot_dimension_numbers<[1], [0], [0], [1], [0, 0, 1, 1], [], []>} : vector<32x32xf32>, vector<32x32xf32>, vector<32x32xf32> -> vector<32x32xf32>
    %c0_21 = arith.constant 0 : index
    %c0_22 = arith.constant 0 : index
    %35 = vector.load %arg7[%c0_21, %c0_22] : memref<1x32xf32, #tpu.memory_space<vmem>>, vector<1x32xf32>
    %36 = vector.broadcast %35 : vector<1x32xf32> to vector<32x32xf32>
    %37 = arith.addf %34, %36 : vector<32x32xf32>
    %cst_23 = arith.constant dense<0.000000e+00> : vector<32x32xf32>
    %38 = tpu.matmul %1, %29, %cst_23 {dimension_numbers = #tpu.dot_dimension_numbers<[1], [0], [0], [1], [0, 0, 1, 1], [], []>} : vector<32x32xf32>, vector<32x32xf32>, vector<32x32xf32> -> vector<32x32xf32>
    %c0_24 = arith.constant 0 : index
    %c0_25 = arith.constant 0 : index
    %39 = vector.load %arg8[%c0_24, %c0_25] : memref<1x32xf32, #tpu.memory_space<vmem>>, vector<1x32xf32>
    %40 = vector.broadcast %39 : vector<1x32xf32> to vector<32x32xf32>
    %41 = arith.addf %38, %40 : vector<32x32xf32>
    %42 = vector.shape_cast %33 : vector<16x32xf32> to vector<2x8x4x8xf32>
    %43 = tpu.transpose %42, [0, 2, 1, 3] : vector<2x8x4x8xf32> -> vector<2x4x8x8xf32>
    %44 = vector.shape_cast %43 : vector<2x4x8x8xf32> to vector<8x8x8xf32>
    %45 = vector.shape_cast %37 : vector<32x32xf32> to vector<2x16x4x8xf32>
    %46 = tpu.transpose %45, [0, 2, 1, 3] : vector<2x16x4x8xf32> -> vector<2x4x16x8xf32>
    %47 = vector.shape_cast %46 : vector<2x4x16x8xf32> to vector<8x16x8xf32>
    %48 = vector.shape_cast %41 : vector<32x32xf32> to vector<2x16x4x8xf32>
    %49 = tpu.transpose %48, [0, 2, 1, 3] : vector<2x16x4x8xf32> -> vector<2x4x16x8xf32>
    %50 = vector.shape_cast %49 : vector<2x4x16x8xf32> to vector<8x16x8xf32>
    "tpu.trace_start"() <{level = 10 : i32, message = "bqd,bkd->bqk"}> : () -> ()
    %cst_26 = arith.constant dense<0.000000e+00> : vector<8x8x16xf32>
    %51 = tpu.matmul %44, %47, %cst_26 {dimension_numbers = #tpu.dot_dimension_numbers<[2], [2], [1], [1], [0, 0, 0, 1, 1, 1], [0], [0]>} : vector<8x8x8xf32>, vector<8x16x8xf32>, vector<8x8x16xf32> -> vector<8x8x16xf32>
    "tpu.trace_stop"() : () -> ()
    %cst_27 = arith.constant dense<0xFF800000> : vector<8x8xf32>
    %52 = vector.multi_reduction <maximumf>, %51, %cst_27 [2] : vector<8x8x16xf32> to vector<8x8xf32>
    %53 = vector.shape_cast %52 : vector<8x8xf32> to vector<8x8x1xf32>
    %54 = vector.broadcast %53 : vector<8x8x1xf32> to vector<8x8x16xf32>
    %55 = arith.subf %51, %54 : vector<8x8x16xf32>
    %56 = math.exp %55 : vector<8x8x16xf32>
    %cst_28 = arith.constant dense<0.000000e+00> : vector<8x8xf32>
    %57 = vector.multi_reduction <add>, %56, %cst_28 [2] : vector<8x8x16xf32> to vector<8x8xf32>
    %58 = vector.shape_cast %57 : vector<8x8xf32> to vector<8x8x1xf32>
    %59 = tpu.reciprocal %58 {approx = true} : vector<8x8x1xf32> -> vector<8x8x1xf32>
    %60 = vector.broadcast %59 : vector<8x8x1xf32> to vector<8x8x16xf32>
    %61 = arith.mulf %56, %60 : vector<8x8x16xf32>
    "tpu.trace_start"() <{level = 10 : i32, message = "bqk,bkd->bqd"}> : () -> ()
    %cst_29 = arith.constant dense<0.000000e+00> : vector<8x8x8xf32>
    %62 = tpu.matmul %61, %50, %cst_29 {dimension_numbers = #tpu.dot_dimension_numbers<[2], [1], [1], [2], [0, 0, 0, 1, 1, 2], [0], [0]>} : vector<8x8x16xf32>, vector<8x16x8xf32>, vector<8x8x8xf32> -> vector<8x8x8xf32>
    "tpu.trace_stop"() : () -> ()
    %63 = vector.shape_cast %62 : vector<8x8x8xf32> to vector<2x4x8x8xf32>
    %64 = tpu.transpose %63, [0, 2, 1, 3] : vector<2x4x8x8xf32> -> vector<2x8x4x8xf32>
    %65 = vector.shape_cast %64 : vector<2x8x4x8xf32> to vector<16x32xf32>
    %c0_30 = arith.constant 0 : index
    %c0_31 = arith.constant 0 : index
    %66 = vector.load %arg5[%c0_30, %c0_31] : memref<32x32xbf16, #tpu.memory_space<vmem>>, vector<32x32xbf16>
    %67 = arith.extf %66 : vector<32x32xbf16> to vector<32x32xf32>
    %cst_32 = arith.constant dense<0.000000e+00> : vector<16x32xf32>
    %68 = tpu.matmul %65, %67, %cst_32 {dimension_numbers = #tpu.dot_dimension_numbers<[1], [0], [0], [1], [0, 0, 1, 1], [], []>} : vector<16x32xf32>, vector<32x32xf32>, vector<16x32xf32> -> vector<16x32xf32>
    %c0_33 = arith.constant 0 : index
    %c0_34 = arith.constant 0 : index
    %69 = vector.load %arg9[%c0_33, %c0_34] : memref<1x32xf32, #tpu.memory_space<vmem>>, vector<1x32xf32>
    %70 = vector.broadcast %69 : vector<1x32xf32> to vector<16x32xf32>
    %71 = arith.addf %68, %70 : vector<16x32xf32>
    %72 = arith.addf %0, %71 : vector<16x32xf32>
    %c0_35 = arith.constant 0 : index
    %c0_36 = arith.constant 0 : index
    %73 = vector.load %arg12[%c0_35, %c0_36] : memref<16x32xf32, #tpu.memory_space<vmem>>, vector<16x32xf32>
    tpu.vector_store %arg12[%c0_35, %c0_36], %72 {strides = array<i32>} : memref<16x32xf32, #tpu.memory_space<vmem>>, vector<16x32xf32>,
    return
  }
}

</mosaic_0001>

<bundles_post_ra>
// kernel: tpu_custom_call.1
= control target key start
LH: loop header
LB: loop body
LE: loop exit
PB: predicated region body
PF: predicated region fallthrough
CT: control target
= control target key end

     0   :  { %17 = vsyncpa [#allocation3], 0  ;;  %s3707_s0 = inlined_call_operand.hbm [shape: f32[16,32], index: 0, kind: input, shape index: {}]   ;;  %s3708_s1 = inlined_call_operand.hbm [shape: f32[32,32], index: 1, kind: input, shape index: {}]   ;;  %s3709_s2 = inlined_call_operand.hbm [shape: bf16[32,32], index: 2, kind: input, shape index: {}]   ;;  %s3710_s3 = inlined_call_operand.hbm [shape: bf16[32,32], index: 3, kind: input, shape index: {}]   ;;  %s3711_s4 = inlined_call_operand.hbm [shape: bf16[32,32], index: 4, kind: input, shape index: {}]   ;;  %s3712_s5 = inlined_call_operand.hbm [shape: bf16[32,32], index: 5, kind: input, shape index: {}]   ;;  %s3713_s6 = inlined_call_operand.vmem [shape: f32[1,32], index: 6, kind: input, shape index: {}]   ;;  %s3714_s7 = inlined_call_operand.vmem [shape: f32[1,32], index: 7, kind: input, shape index: {}]   ;;  %s3715_s8 = inlined_call_operand.vmem [shape: f32[1,32], index: 8, kind: input, shape index: {}]   ;;  %s3716_s9 = inlined_call_operand.vmem [shape: f32[1,32], index: 9, kind: input, shape index: {}]   ;;  %s3717_s10 = inlined_call_operand.vmem [shape: f32[1,32], index: 10, kind: input, shape index: {}]   ;;  %s3718_s11 = inlined_call_operand.vmem [shape: f32[1,32], index: 11, kind: input, shape index: {}]   ;;  %s3719_s12 = inlined_call_operand.hbm [shape: f32[16,32], index: 12, kind: output, shape index: {}]  }
   0x1   :  { %18 = vsyncpa [#allocation6], 0 }
   0x2   :  { %19 = vsyncpa [#allocation9], 0 }
   0x3   :  { %20 = vsyncpa [#allocation12], 0 }
   0x4   :  { %21 = vsyncpa [#allocation4], 0  ;;  %s39_s23 = sshll.u32 %s3708_s1, 4  ;;  %s2759_s24 = smov [#allocation5]   ;;  %s40_s23 = int_to_ptr.hbm [resolvable:$true] %s39_s23 }
   0x5   :  { %s41_s25 = sshll.u32 %s2759_s24, 4  ;;  %s2760_s26 = smov 128   ;;  %s42_s25 = int_to_ptr.vmem [resolvable:$true] %s41_s25 }
   0x6   :  { %s2761_s27 = smov 8   ;;  %s65_s30 = sshll.u32 %s3710_s3, 4  ;;  %s66_s30 = int_to_ptr.hbm [resolvable:$true] %s65_s30 }
   0x7   :  { %47 = dma.hbm_to_vmem [thread:$0]  %s40_s23, 512, %s42_s25, [#allocation6], %s2760_s26, %s2760_s26, %s2761_s27  }
   0x8   :  { %s2762_s13 = smov [#allocation8]   ;;  %s26_s1 = sshll.u32 %s3707_s0, 4  ;;  %s27_s1 = int_to_ptr.hbm [resolvable:$true] %s26_s1 }
   0x9   :  { %s67_s14 = sshll.u32 %s2762_s13, 4  ;;  %s2763_s17 = smov 64   ;;  %s68_s14 = int_to_ptr.vmem [resolvable:$true] %s67_s14 }
   0xa   :  { %s2764_s18 = smov 4   ;;  %s52_s21 = sshll.u32 %s3709_s2, 4  ;;  %s53_s21 = int_to_ptr.hbm [resolvable:$true] %s52_s21 }
   0xb   :  { %73 = dma.hbm_to_vmem [thread:$0]  %s66_s30, 256, %s68_s14, [#allocation9], %s2763_s17, %s2763_s17, %s2764_s18  }
   0xc   :  { %s2765_s22 = smov [#allocation2]   ;;  %s2766_s3 = smov [#allocation7]  }
   0xd   :  { %s28_s23 = sshll.u32 %s2765_s22, 4  ;;  %s54_s24 = sshll.u32 %s2766_s3, 4  ;;  %s29_s23 = int_to_ptr.vmem [resolvable:$true] %s28_s23  ;;  %s55_s24 = int_to_ptr.vmem [resolvable:$true] %s54_s24 }
   0xe   :  { %34 = dma.hbm_to_vmem [thread:$0]  %s27_s1, 256, %s29_s23, [#allocation3], %s2760_s26, %s2760_s26, %s2761_s27  }
   0xf   :  { %s78_s28 = sshll.u32 %s3711_s4, 4  ;;  %s91_s2 = sshll.u32 %s3712_s5, 4  ;;  %s79_s28 = int_to_ptr.hbm [resolvable:$true] %s78_s28  ;;  %s92_s2 = int_to_ptr.hbm [resolvable:$true] %s91_s2 }
  0x10   :  { %60 = dma.hbm_to_vmem [thread:$0]  %s53_s21, 256, %s55_s24, [#allocation6], %s2763_s17, %s2763_s17, %s2764_s18  }
  0x11   :  { %s2767_s13 = smov [#allocation10]   ;;  %s2768_s15 = smov [#allocation11]  }
  0x12   :  { %s80_s14 = sshll.u32 %s2767_s13, 4  ;;  %s93_s16 = sshll.u32 %s2768_s15, 4  ;;  %s81_s14 = int_to_ptr.vmem [resolvable:$true] %s80_s14  ;;  %s94_s16 = int_to_ptr.vmem [resolvable:$true] %s93_s16 }
  0x13   :  { %86 = dma.hbm_to_vmem [thread:$0]  %s79_s28, 256, %s81_s14, [#allocation9], %s2763_s17, %s2763_s17, %s2764_s18  }
  0x14   :  { %99 = dma.hbm_to_vmem [thread:$0]  %s92_s2, 256, %s94_s16, [#allocation12], %s2763_s17, %s2763_s17, %s2764_s18  }
  0x15   :  { %2749 = dma.done.wait [#allocation3], 256  }
  0x16   :  { %2750 = vsyncadd [#allocation3], 4294967040 }
  0x17   :  { %2751 = dma.done.wait [#allocation6], 768  }
  0x18   :  { %2752 = vsyncadd [#allocation6], 4294966528 }
  0x19   :  { %2753 = dma.done.wait [#allocation9], 512  }
  0x1a   :  { %2754 = vsyncadd [#allocation9], 4294966784 }
  0x1b   :  { %2755 = dma.done.wait [#allocation12], 256  }
  0x1c   :  { %2756 = vsyncadd [#allocation12], 4294967040  ;;  %vm142_vm0 = vcmask 261120   ;;  %v136_v0 = vld [vmem:[#allocation2] sm:$0xff]  ;;  %v137_v2 = vld [vmem:[#allocation2 + $0x8] sm:$0xff]  ;;  %v2769_v7 = vmov 32.0  }
  0x1d   :  { %v143_v1 = vsel %vm142_vm0, %v136_v0, 0.0  ;;  %v146_v3 = vsel %vm142_vm0, %v137_v2, 0.0  ;;  %v2475_v4 = vld [vmem:[#allocation8 + $0x8] sm:$0xff]   ;;  %2537 = vrcp.f32 %v2769_v7  ;;  %v2451_v9 = vld [vmem:[#allocation8] sm:$0xff]   ;;  %v2869_v13 = vld [vmem:[#allocation5] sm:$0xff]  ;;  %s2770_s1 = smov 112  }
  0x1e   :  { %144 = vadd.xlane.f32.xlu0 %v143_v1  ;;  %v2457_v5 = vunpack.c.h.bf16 %v2475_v4  ;;  %v2456_v6 = vunpack.c.l.bf16 %v2475_v4  ;;  %v2453_v10 = vunpack.c.h.bf16 %v2451_v9  ;;  %v2452_v11 = vunpack.c.l.bf16 %v2451_v9  ;;  %v2873_v16 = vld [vmem:[#allocation5 + $0x8] sm:$0xff]  ;;  %v2877_v19 = vld [vmem:[#allocation5 + $0x10] sm:$0xff]  ;;  %v2885_v24 = vld [vmem:[#allocation5 + $0x18] sm:$0xff]  ;;  %s2771_s17 = smov 120   ;;  %s2772_s18 = smov 104  }
  0x1f   :  { %v2531_v32 = vld [vmem:[%s3714_s7] ss:$0 sm:$0xff]  ;;  %v2474_v36 = vld [vmem:[#allocation7 + $0x8] sm:$0xff]   ;;  %v2443_v37 = vld [vmem:[#allocation7] sm:$0xff]   ;;  %vm394_vm14 = vcmask 1047556   ;;  %vm1574_vm15 = vcmask 64512  }
  0x20   :  { %323 = vmatpush.msra.mxu1 %v2457_v5  ;;  %v2449_v38 = vunpack.c.h.bf16 %v2474_v36  ;;  %v2448_v39 = vunpack.c.l.bf16 %v2474_v36  ;;  %v2445_v42 = vunpack.c.h.bf16 %v2443_v37  ;;  %v2444_v44 = vunpack.c.l.bf16 %v2443_v37  ;;  %s2776_s23 = smov 16   ;;  %s2777_s0 = smov [#allocation13]  }
  0x21   :  { %s2380_s25 = sshll.u32 %s2777_s0, 4  ;;  %s2382_s30 = sshll.u32 %s3719_s12, 4  ;;  %s2381_s25 = int_to_ptr.vmem [resolvable:$true] %s2380_s25  ;;  %s2383_s30 = int_to_ptr.hbm [resolvable:$true] %s2382_s30 }
  0x22   :  { %324 = vmatpush.msra.mxu1 %v2456_v6  ;;  %284 = vmatpush.msra.mxu0 %v2449_v38 }
  0x23   :  { %v2538_v8 = vpop.eup %2537 }
  0x24   :  { %v150_v12 = vmul.f32 32.0, %v2538_v8  ;;  %325 = vmatpush.msra.mxu1 %v2453_v10  ;;  %vm154_vm1 = vweird.f32 %v2538_v8  ;;  %285 = vmatpush.msra.mxu0 %v2448_v39 }
  0x26   :  { %147 = vadd.xlane.f32.xlu0 %v146_v3  ;;  %326 = vmatpush.msra.mxu1 %v2452_v11  ;;  %v151_v14 = vsub.f32 1.0, %v150_v12 }
  0x27   :  { %2400 = vmatmul.msk.f32.vlgmr.msra.gmra.mxu1 %vm142_vm0, %v2869_v13  ;;  %286 = vmatpush.msra.mxu0 %v2445_v42 }
  0x28   :  { %v152_v15 = vmul.f32 %v2538_v8, %v151_v14 }
  0x29   :  { %287 = vmatpush.msra.mxu0 %v2444_v44 }
  0x2a   :  { %v153_v17 = vadd.f32 %v2538_v8, %v152_v15 }
  0x2c   :  { %v155_v18 = vsel %vm154_vm1, %v2538_v8, %v153_v17  ;;  %vm1807_vm1 = vcmask 130048  }
  0x2f   :  { %2401 = vmatmul.msk.f32.gmra.mxu1 %vm142_vm0, %v2873_v16 }
  0x37   :  { %2402 = vmatmul.msk.f32.gmra.mxu1 %vm142_vm0, %v2877_v19 }
  0x3f   :  { %2403 = vmatmul.msk.f32.gmra.mxu1 %vm142_vm0, %v2885_v24 }
  0x91   :  { %v145_v20 = vpop.xlane.xlu0 %144 }
  0x92   :  { %v156_v21 = vmul.f32 %v155_v18, %v145_v20 }
  0x94   :  { %v2881_v22 = vsub.f32 %v136_v0, %v156_v21  ;;  %v2532_v21 = vld [vmem:[%s3717_s10] ss:$0 sm:$0xff] }
  0x96   :  { %v160_v23 = vmul.f32 %v2881_v22, %v2881_v22 }
  0x98   :  { %v162_v25 = vsel %vm142_vm0, %v160_v23, 0.0 }
  0x99   :  { %163 = vadd.xlane.f32.xlu1 %v162_v25  ;;  %v148_v26 = vpop.xlane.xlu0 %147 }
  0x9a   :  { %v157_v27 = vmul.f32 %v155_v18, %v148_v26 }
  0x9c   :  { %v2890_v28 = vsub.f32 %v137_v2, %v157_v27  ;;  %v2533_v27 = vld [vmem:[%s3718_s11] ss:$0 sm:$0xff] }
  0x9e   :  { %v161_v29 = vmul.f32 %v2890_v28, %v2890_v28 }
  0xa0   :  { %v165_v30 = vsel %vm142_vm0, %v161_v29, 0.0 }
  0xa1   :  { %166 = vadd.xlane.f32.xlu1 %v165_v30 }
  0xa4   :  { %v328_v31 = vpop.f32.mrf.mxu1 }
  0xa5   :  { %v2898_v33 = vadd.f32 %v2531_v32, %v328_v31 }
  0xa7   :  { %630 = vrot.lane.b32.xlu2 %v2898_v33, %s2770_s1 }
  0xac   :  { %v331_v34 = vpop.f32.mrf.mxu1 }
  0xad   :  { %v2900_v35 = vadd.f32 %v2531_v32, %v331_v34 }
  0xaf   :  { %644 = vrot.lane.b32.xlu0 %v2900_v35, %s2772_s18  ;;  %642 = vrot.lane.b32.xlu2 %v2898_v33, %s2772_s18 }
  0xb4   :  { %v334_v43 = vpop.f32.mrf.mxu1 }
  0xb5   :  { %v2916_v57 = vadd.f32 %v2531_v32, %v334_v43  ;;  %v2476_v43 = vld [vmem:[#allocation10 + $0x8] sm:$0xff]  }
  0xb6   :  { %v2465_v44 = vunpack.c.h.bf16 %v2476_v43 }
  0xb7   :  { %620 = vrot.lane.b32.xlu2 %v2900_v35, %s2771_s17 }
  0xb8   :  { %356 = vmatpush.msra.mxu2 %v2465_v44  ;;  %2478 = vmatpush.msra.mxu3 %v2465_v44 }
  0xba   :  { %618 = vrot.lane.b32.xlu1 %v2898_v33, %s2771_s17 }
  0xbc   :  { %v337_v49 = vpop.f32.mrf.mxu1 }
  0xbd   :  { %v2912_v51 = vadd.f32 %v2531_v32, %v337_v49 }
  0xbf   :  { %632 = vrot.lane.b32.xlu2 %v2900_v35, %s2770_s1 }
  0xc2   :  { %636 = vrot.lane.b32.xlu1 %v2912_v51, %s2770_s1 }
  0xca   :  { %634 = vrot.lane.b32.xlu1 %v2916_v57, %s2770_s1 }
 0x10c   :  { %v164_v40 = vpop.xlane.xlu1 %163 }
 0x10d   :  { %v168_v41 = vmul.f32 0.032258064, %v164_v40 }
 0x10f   :  { %2539 = vrsqrt.f32 %v168_v41  ;;  %vm177_vm2 = vcmp.eq.f32.partialorder %v168_v41, inf  ;;  %v180_v60 = vand.u32 2147483648, %v168_v41  ;;  %vm179_vm3 = vcmp.eq.f32.partialorder %v168_v41, 0.0 }
 0x114   :  { %v167_v45 = vpop.xlane.xlu1 %166 }
 0x115   :  { %v2540_v46 = vpop.eup %2539  ;;  %v169_v47 = vmul.f32 0.032258064, %v167_v45  ;;  %v2464_v45 = vunpack.c.l.bf16 %v2476_v43 }
 0x116   :  { %v171_v48 = vmul.f32 %v2540_v46, %v168_v41 }
 0x117   :  { %2541 = vrsqrt.f32 %v169_v47  ;;  %vm189_vm4 = vcmp.eq.f32.partialorder %v169_v47, inf  ;;  %v192_v4 = vand.u32 2147483648, %v169_v47  ;;  %vm191_vm5 = vcmp.eq.f32.partialorder %v169_v47, 0.0  ;;  %357 = vmatpush.msra.mxu2 %v2464_v45  ;;  %2479 = vmatpush.msra.mxu3 %v2464_v45 }
 0x118   :  { %v172_v50 = vmul.f32 %v2540_v46, %v171_v48 }
 0x11a   :  { %v173_v52 = vmul.f32 0.5, %v172_v50 }
 0x11c   :  { %v174_v53 = vsub.f32 1.5, %v173_v52  ;;  %v2773_v52 = vmov 1983009808  }
 0x11d   :  { %v2542_v54 = vpop.eup %2541 }
 0x11e   :  { %v175_v55 = vmul.f32 %v2540_v46, %v174_v53  ;;  %v183_v56 = vmul.f32 %v2542_v54, %v169_v47  ;;  %v631_v46 = vpop.permute.xlu2 %630  ;;  %v399_v53 = vunpack.c.l.s4 %v2773_v52 }
 0x120   :  { %v176_v58 = vmul.f32 %v175_v55, %v168_v41  ;;  %v184_v59 = vmul.f32 %v2542_v54, %v183_v56  ;;  %v656_v56 = vrot.slane %v2898_v33, 4 }
 0x122   :  { %v178_v61 = vsel %vm177_vm2, %v168_v41, %v176_v58  ;;  %v185_v62 = vmul.f32 0.5, %v184_v59  ;;  %v2939_v58 = vunpack.c.0.s8 %v399_v53  ;;  %vm2328_vm2 = vcmask 195584  }
 0x123   :  { %v181_v63 = vsel %vm179_vm3, %v180_v60, %v178_v61  ;;  %v712_v60 = vrot.slane %v2900_v35, 4  ;;  %v2774_v61 = vmov 1934713408  }
 0x124   :  { %v186_v0 = vsub.f32 1.5, %v185_v62  ;;  %v195_v1 = vadd.f32 1e-06, %v181_v63  ;;  %v423_v62 = vunpack.c.l.s4 %v2774_v61 }
 0x126   :  { %v187_v2 = vmul.f32 %v2542_v54, %v186_v0  ;;  %2543 = vrcp.f32 %v195_v1  ;;  %v208_v11 = vand.u32 2147483648, %v195_v1  ;;  %v206_v14 = vand.u32 2147483647, %v195_v1  ;;  %v643_v49 = vpop.permute.xlu2 %642 }
 0x127   :  { %vm202_vm7 = vweird.f32 %v195_v1 }
 0x128   :  { %v188_v3 = vmul.f32 %v187_v2, %v169_v47  ;;  %v209_v18 = vor.u32 1.1754944e-38, %v208_v11  ;;  %vm207_vm9 = vcmp.eq.f32.partialorder %v206_v14, 8.507059e+37 }
 0x12a   :  { %v190_v5 = vsel %vm189_vm4, %v169_v47, %v188_v3  ;;  %v2459_v47 = vld [vmem:[#allocation10] sm:$0xff]  }
 0x12b   :  { %v193_v6 = vsel %vm191_vm5, %v192_v4, %v190_v5  ;;  %v2461_v48 = vunpack.c.h.bf16 %v2459_v47  ;;  %v2460_v50 = vunpack.c.l.bf16 %v2459_v47 }
 0x12c   :  { %v2544_v7 = vpop.eup %2543  ;;  %v196_v8 = vadd.f32 1e-06, %v193_v6 }
 0x12d   :  { %v198_v9 = vmul.f32 %v2544_v7, %v195_v1  ;;  %vm203_vm6 = vweird.f32 %v2544_v7  ;;  %358 = vmatpush.msra.mxu2 %v2461_v48  ;;  %2480 = vmatpush.msra.mxu3 %v2461_v48 }
 0x12e   :  { %2545 = vrcp.f32 %v196_v8  ;;  %vm204_vm8 = vmor %vm202_vm7, %vm203_vm6  ;;  %v223_v30 = vand.u32 2147483648, %v196_v8  ;;  %v221_v34 = vand.u32 2147483647, %v196_v8  ;;  %vm217_vm11 = vweird.f32 %v196_v8  ;;  %v621_v54 = vpop.permute.xlu2 %620 }
 0x12f   :  { %v199_v10 = vsub.f32 1.0, %v198_v9  ;;  %359 = vmatpush.msra.mxu2 %v2460_v50  ;;  %2481 = vmatpush.msra.mxu3 %v2460_v50  ;;  %v724_v63 = vrot.slane %v621_v54, 4 }
 0x130   :  { %v224_v38 = vor.u32 1.1754944e-38, %v223_v30  ;;  %vm222_vm13 = vcmp.eq.f32.partialorder %v221_v34, 8.507059e+37  ;;  %2404 = vmatmul.msk.f32.vlgmr.msra.gmra.mxu2 %vm142_vm0, %v2869_v13  ;;  %2407 = vmatmul.msk.f32.vlgmr.msra.gmra.mxu3 %vm142_vm0, %v2885_v24  ;;  %v657_v13 = vsel %vm394_vm14, %v631_v46, %v656_v56  ;;  %v666_v24 = vrot.slane %v643_v49, 4 }
 0x131   :  { %v200_v12 = vmul.f32 %v2544_v7, %v199_v10  ;;  %v665_v0 = vperm.slane %v657_v13, %v2939_v58 }
 0x133   :  { %v201_v15 = vadd.f32 %v2544_v7, %v200_v12 }
 0x134   :  { %v2546_v17 = vpop.eup %2545 }
 0x135   :  { %v205_v20 = vsel %vm204_vm8, %v2544_v7, %v201_v15  ;;  %v213_v23 = vmul.f32 %v2546_v17, %v196_v8  ;;  %vm218_vm10 = vweird.f32 %v2546_v17  ;;  %v2950_v7 = vunpack.c.0.s8 %v423_v62  ;;  %v645_v8 = vpop.permute.xlu0 %644 }
 0x136   :  { %v210_v25 = vsel %vm207_vm9, %v209_v18, %v205_v20  ;;  %vm219_vm12 = vmor %vm217_vm11, %vm218_vm10  ;;  %v633_v2 = vpop.permute.xlu2 %632  ;;  %v722_v11 = vrot.slane %v645_v8, 4  ;;  %v725_v12 = vsel %vm394_vm14, %v645_v8, %v724_v63 }
 0x137   :  { %v211_v26 = vmul.f32 %v210_v25, %v2881_v22  ;;  %v214_v29 = vsub.f32 1.0, %v213_v23  ;;  %v710_v3 = vrot.slane %v633_v2, 4  ;;  %v713_v4 = vsel %vm394_vm14, %v633_v2, %v712_v60 }
 0x138   :  { %2405 = vmatmul.msk.f32.gmra.mxu2 %vm142_vm0, %v2873_v16  ;;  %v721_v16 = vperm.slane %v713_v4, %v2939_v58  ;;  %v733_v18 = vperm.slane %v725_v12, %v2939_v58  ;;  %v723_v23 = vsel %vm394_vm14, %v722_v11, %v621_v54 }
 0x139   :  { %v230_v31 = vmul.f32 %v2532_v21, %v211_v26  ;;  %v215_v32 = vmul.f32 %v2546_v17, %v214_v29  ;;  %v711_v10 = vsel %vm394_vm14, %v710_v3, %v2900_v35 }
 0x13a   :  { %v717_v15 = vperm.slane %v711_v10, %v2939_v58  ;;  %v746_v29 = vrot.slane %v733_v18, 4 }
 0x13b   :  { %v236_v36 = vadd.f32 %v2533_v27, %v230_v31  ;;  %v216_v37 = vadd.f32 %v2546_v17, %v215_v32 }
 0x13c   :  { %v736_v26 = vrot.slane %v717_v15, 4 }
 0x13d   :  { %2398 = vmatmul.msk.f32.vlgmr.msra.gmra.mxu0 %vm142_vm0, %v236_v36  ;;  %v220_v39 = vsel %vm219_vm12, %v2546_v17, %v216_v37  ;;  %v748_v17 = vrot.slane %v721_v16, 4 }
 0x13e   :  { %v225_v22 = vsel %vm222_vm13, %v224_v38, %v220_v39  ;;  %v747_v38 = vsel %vm394_vm14, %v746_v29, %v721_v16 }
 0x13f   :  { %v226_v40 = vmul.f32 %v225_v22, %v2890_v28  ;;  %v654_v28 = vrot.slane %v631_v46, 4  ;;  %v749_v30 = vsel %vm394_vm14, %v733_v18, %v748_v17 }
 0x140   :  { %2406 = vmatmul.msk.f32.gmra.mxu2 %vm142_vm0, %v2877_v19  ;;  %v757_v31 = vperm.slane %v749_v30, %v2950_v7 }
 0x141   :  { %v231_v41 = vmul.f32 %v2532_v21, %v226_v40  ;;  %v655_v55 = vsel %vm394_vm14, %v654_v28, %v2898_v33  ;;  %v619_v33 = vpop.permute.xlu1 %618  ;;  %v692_v21 = vrot.slane %v665_v0, 4  ;;  %v753_v40 = vperm.slane %v747_v38, %v2950_v7 }
 0x142   :  { %v661_v59 = vperm.slane %v655_v55, %v2939_v58  ;;  %v667_v5 = vsel %vm394_vm14, %v666_v24, %v619_v33  ;;  %v668_v6 = vrot.slane %v619_v33, 4 }
 0x143   :  { %v237_v42 = vadd.f32 %v2533_v27, %v231_v41  ;;  %v673_v9 = vperm.slane %v667_v5, %v2939_v58  ;;  %v729_v27 = vperm.slane %v723_v23, %v2939_v58  ;;  %v764_v41 = vrot.slane %v757_v31, 4 }
 0x144   :  { %v680_v1 = vrot.slane %v661_v59, 4  ;;  %v669_v14 = vsel %vm394_vm14, %v643_v49, %v668_v6  ;;  %v762_v49 = vrot.slane %v753_v40, 4 }
 0x145   :  { %2399 = vmatmul.msk.f32.gmra.mxu0 %vm142_vm0, %v237_v42  ;;  %v677_v20 = vperm.slane %v669_v14, %v2939_v58  ;;  %v678_v25 = vrot.slane %v673_v9, 4  ;;  %v734_v19 = vrot.slane %v729_v27, 4  ;;  %v737_v37 = vsel %vm394_vm14, %v729_v27, %v736_v26 }
 0x146   :  { %v681_v35 = vsel %vm394_vm14, %v673_v9, %v680_v1  ;;  %v745_v22 = vperm.slane %v737_v37, %v2950_v7  ;;  %v765_v50 = vsel %vm394_vm14, 0.0, %v764_v41  ;;  %v943_v28 = vsel %vm394_vm14, %v764_v41, %v753_v40 }
 0x147   :  { %v679_v32 = vsel %vm394_vm14, %v678_v25, %v661_v59  ;;  %v689_v34 = vperm.slane %v681_v35, %v2950_v7  ;;  %v690_v36 = vrot.slane %v677_v20, 4  ;;  %v735_v43 = vsel %vm394_vm14, %v734_v19, %v717_v15 }
 0x148   :  { %v685_v39 = vperm.slane %v679_v32, %v2950_v7  ;;  %v693_v44 = vsel %vm394_vm14, %v677_v20, %v692_v21  ;;  %v741_v47 = vperm.slane %v735_v43, %v2950_v7  ;;  %v760_v48 = vrot.slane %v745_v22, 4 }
 0x149   :  { %v691_v42 = vsel %vm394_vm14, %v690_v36, %v665_v0  ;;  %v948_v52 = vrot.slane %v765_v50, 4  ;;  %v701_v53 = vperm.slane %v693_v44, %v2950_v7  ;;  %v763_v56 = vsel %vm394_vm14, 0.0, %v762_v49 }
 0x14a   :  { %v697_v45 = vperm.slane %v691_v42, %v2950_v7  ;;  %v702_v46 = vrot.slane %v685_v39, 4  ;;  %v758_v54 = vrot.slane %v741_v47, 4  ;;  %v761_v55 = vsel %vm394_vm14, 0.0, %v760_v48 }
 0x14b   :  { %v704_v59 = vrot.slane %v689_v34, 4  ;;  %v937_v13 = vrot.slane %v761_v55, 4  ;;  %v949_v24 = vsel %vm394_vm14, %v948_v52, %v763_v56  ;;  %v708_v61 = vrot.slane %v701_v53, 4 }
 0x14c   :  { %v706_v60 = vrot.slane %v697_v45, 4  ;;  %v703_v62 = vsel %vm394_vm14, 0.0, %v702_v46  ;;  %v759_v0 = vsel %vm394_vm14, 0.0, %v758_v54  ;;  %v932_v1 = vsel %vm394_vm14, %v760_v48, %v741_v47 }
 0x14d   :  { %v705_v63 = vsel %vm394_vm14, 0.0, %v704_v59  ;;  %v709_v33 = vsel %vm394_vm14, 0.0, %v708_v61  ;;  %v947_v4 = vperm.slane %v943_v28, %v2939_v58  ;;  %v938_v6 = vsel %vm394_vm14, %v937_v13, %v759_v0 }
 0x14e   :  { %v707_v2 = vsel %vm394_vm14, 0.0, %v706_v60  ;;  %v883_v3 = vrot.slane %v705_v63, 4  ;;  %v894_v5 = vrot.slane %v709_v33, 4  ;;  %v953_v16 = vperm.slane %v949_v24, %v2939_v58  ;;  %v2534_v63 = vld [vmem:[%s3713_s6] ss:$0 sm:$0xff] }
 0x14f   :  { %v878_v8 = vsel %vm394_vm14, %v704_v59, %v685_v39  ;;  %v936_v9 = vperm.slane %v932_v1, %v2939_v58  ;;  %v942_v10 = vperm.slane %v938_v6, %v2939_v58  ;;  %v889_v12 = vsel %vm394_vm14, %v708_v61, %v697_v45 }
 0x150   :  { %v884_v11 = vsel %vm394_vm14, %v883_v3, %v703_v62  ;;  %v966_v14 = vrot.slane %v953_v16, 4  ;;  %v882_v15 = vperm.slane %v878_v8, %v2939_v58  ;;  %v895_v20 = vsel %vm394_vm14, %v894_v5, %v707_v2 }
 0x151   :  { %v888_v17 = vperm.slane %v884_v11, %v2939_v58  ;;  %v954_v18 = vrot.slane %v942_v10, 4  ;;  %v893_v23 = vperm.slane %v889_v12, %v2939_v58  ;;  %v899_v25 = vperm.slane %v895_v20, %v2939_v58  ;;  %v637_v11 = vpop.permute.xlu1 %636 }
 0x152   :  { %v967_v21 = vsel %vm394_vm14, %v966_v14, %v947_v4  ;;  %v956_v32 = vrot.slane %v936_v9, 4  ;;  %v968_v36 = vrot.slane %v947_v4, 4  ;;  %v902_v39 = vrot.slane %v882_v15, 4  ;;  %v3063_v4 = vld [vmem:[%s3715_s8] ss:$0 sm:$0xff]  ;;  %s2775_s8 = smov 24  }
 0x153   :  { %v900_v35 = vrot.slane %v888_v17, 4  ;;  %v955_v26 = vsel %vm394_vm14, %v954_v18, %v936_v9  ;;  %v973_v27 = vperm.slane %v967_v21, %v2950_v7  ;;  %v912_v31 = vrot.slane %v899_v25, 4 }
 0x154   :  { %v961_v29 = vperm.slane %v955_v26, %v2950_v7  ;;  %v957_v38 = vsel %vm394_vm14, %v942_v10, %v956_v32  ;;  %v969_v42 = vsel %vm394_vm14, %v953_v16, %v968_v36  ;;  %v903_v49 = vsel %vm394_vm14, %v888_v17, %v902_v39 }
 0x155   :  { %v901_v30 = vsel %vm394_vm14, %v900_v35, %v882_v15  ;;  %v978_v34 = vrot.slane %v973_v27, 4  ;;  %v913_v37 = vsel %vm394_vm14, %v912_v31, %v893_v23  ;;  %v965_v43 = vperm.slane %v957_v38, %v2950_v7 }
 0x156   :  { %v980_v19 = vrot.slane %v961_v29, 4  ;;  %v907_v40 = vperm.slane %v901_v30, %v2950_v7  ;;  %v919_v41 = vperm.slane %v913_v37, %v2950_v7  ;;  %v977_v44 = vperm.slane %v969_v42, %v2950_v7 }
 0x157   :  { %v979_v22 = vsel %vm394_vm14, %v978_v34, %v961_v29  ;;  %v914_v50 = vrot.slane %v893_v23, 4  ;;  %v911_v54 = vperm.slane %v903_v49, %v2950_v7  ;;  %v984_v61 = vrot.slane %v965_v43, 4 }
 0x158   :  { %2408 = vmatpush.xpose.msk.msrb.mxu3 %vm1574_vm15, %v979_v22  ;;  %v924_v45 = vrot.slane %v919_v41, 4  ;;  %v981_v46 = vsel %vm394_vm14, %v973_v27, %v980_v19  ;;  %v982_v47 = vrot.slane %v977_v44, 4  ;;  %v926_v48 = vrot.slane %v907_v40, 4 }
 0x159   :  { %v915_v53 = vsel %vm394_vm14, %v899_v25, %v914_v50  ;;  %v930_v24 = vrot.slane %v911_v54, 4  ;;  %v3036_v62 = vsel %vm394_vm14, %v977_v44, %v984_v61  ;;  %v824_v17 = vrot.slane %v2912_v51, 4  ;;  %v635_v18 = vpop.permute.xlu1 %634 }
 0x15a   :  { %v925_v28 = vsel %vm394_vm14, %v924_v45, %v907_v40  ;;  %v983_v52 = vsel %vm394_vm14, %v982_v47, %v965_v43  ;;  %v923_v55 = vperm.slane %v915_v53, %v2950_v7  ;;  %v927_v56 = vsel %vm394_vm14, %v919_v41, %v926_v48 }
 0x15b   :  { %2414 = vmatpush.xpose.msk.msrb.mxu0 %vm1574_vm15, %v983_v52  ;;  %v822_v21 = vrot.slane %v637_v11, 4  ;;  %v768_v23 = vrot.slane %v2916_v57, 4  ;;  %v766_v35 = vrot.slane %v635_v18, 4  ;;  %v825_v27 = vsel %vm394_vm14, %v637_v11, %v824_v17 }
 0x15c   :  { %2409 = vmatpush.xpose.msk.msrb.mxu3 %vm1574_vm15, %v925_v28  ;;  %v928_v59 = vrot.slane %v923_v55, 4  ;;  %v3033_v60 = vsel %vm394_vm14, %v923_v55, %v930_v24  ;;  %v3092_v38 = vperm.slane %v825_v27, %v2939_v58 }
 0x15d   :  { %v823_v30 = vsel %vm394_vm14, %v822_v21, %v2912_v51  ;;  %v769_v31 = vsel %vm394_vm14, %v635_v18, %v768_v23  ;;  %v767_v39 = vsel %vm394_vm14, %v766_v35, %v2916_v57 }
 0x15e   :  { %v929_v13 = vsel %vm394_vm14, %v928_v59, %v911_v54  ;;  %v3099_v41 = vperm.slane %v769_v31, %v2939_v58  ;;  %v3105_v47 = vperm.slane %v767_v39, %v2939_v58  ;;  %v860_v48 = vrot.slane %v3092_v38, 4 }
 0x15f   :  { %2415 = vmatpush.xpose.msk.msrb.mxu0 %vm1574_vm15, %v929_v13 }
 0x160   :  { %2411 = vmatpush.xpose.msk.msra.mxu3 %vm1574_vm15, %v981_v46  ;;  %v804_v53 = vrot.slane %v3099_v41, 4 }
 0x164   :  { %2412 = vmatpush.xpose.msk.msra.mxu3 %vm1574_vm15, %v927_v56 }
 0x1b3   :  { %v361_v3 = vpop.f32.mrf.mxu2 }
 0x1b4   :  { %v3066_v6 = vadd.f32 %v3063_v4, %v361_v3 }
 0x1ba   :  { %v289_v0 = vpop.f32.mrf.mxu0 }
 0x1bb   :  { %v290_v1 = vadd.f32 %v2534_v63, %v289_v0  ;;  %v364_v5 = vpop.f32.mrf.mxu2 }
 0x1bc   :  { %v3069_v16 = vadd.f32 %v3063_v4, %v364_v5 }
 0x1bd   :  { %381 = vrot.lane.b32.xlu0 %v290_v1, %s2770_s1  ;;  %375 = vrot.lane.b32.xlu2 %v290_v1, %s2771_s17  ;;  %v396_v29 = vrot.slane %v290_v1, 4 }
 0x1be   :  { %v2506_v8 = vpack.i.bf16 %v3066_v6, %v3069_v16 }
 0x1c2   :  { %v292_v2 = vpop.f32.mrf.mxu0 }
 0x1c3   :  { %v3043_v33 = vadd.f32 %v2534_v63, %v292_v2  ;;  %v792_v63 = vrot.slane %v3105_v47, 4 }
 0x1c5   :  { %624 = vrot.lane.b32.xlu0 %v2912_v51, %s2771_s17  ;;  %387 = vrot.lane.b32.xlu2 %v290_v1, %s2772_s18  ;;  %v452_v24 = vrot.slane %v3043_v33, 4 }
 0x1c6   :  { %383 = vrot.lane.b32.xlu1 %v3043_v33, %s2770_s1 }
 0x1cd   :  { %622 = vrot.lane.b32.xlu0 %v2916_v57, %s2771_s17  ;;  %648 = vrot.lane.b32.xlu2 %v2912_v51, %s2772_s18  ;;  %v829_v51 = vperm.slane %v823_v30, %v2939_v58 }
 0x1ce   :  { %2507 = vrot.lane.b32.xlu1 %v2506_v8, %s2770_s1 }
 0x1cf   :  { %v848_v52 = vrot.slane %v829_v51, 4 }
 0x1d5   :  { %646 = vrot.lane.b32.xlu2 %v2916_v57, %s2772_s18  ;;  %377 = vrot.lane.b32.xlu0 %v3043_v33, %s2771_s17 }
 0x1dd   :  { %389 = vrot.lane.b32.xlu2 %v3043_v33, %s2772_s18  ;;  %2512 = vrot.lane.b32.xlu0 %v2506_v8, %s2772_s18 }
 0x1e5   :  { %2502 = vrot.lane.b32.xlu2 %v2506_v8, %s2771_s17 }
 0x217   :  { %v376_v9 = vpop.permute.xlu2 %375 }
 0x218   :  { %v408_v14 = vrot.slane %v376_v9, 4 }
 0x21f   :  { %v388_v10 = vpop.permute.xlu2 %387 }
 0x220   :  { %v406_v15 = vrot.slane %v388_v10, 4  ;;  %v409_v20 = vsel %vm394_vm14, %v388_v10, %v408_v14 }
 0x221   :  { %v417_v26 = vperm.slane %v409_v20, %v2939_v58 }
 0x222   :  { %v407_v25 = vsel %vm394_vm14, %v406_v15, %v376_v9 }
 0x223   :  { %v413_v32 = vperm.slane %v407_v25, %v2939_v58  ;;  %v430_v22 = vrot.slane %v417_v26, 4 }
 0x225   :  { %v418_v43 = vrot.slane %v413_v32, 4 }
 0x227   :  { %v3076_v12 = vpop.permute.xlu2 %648 }
 0x228   :  { %v834_v56 = vrot.slane %v3076_v12, 4 }
 0x22f   :  { %v3088_v34 = vpop.permute.xlu2 %646  ;;  %v382_v36 = vpop.permute.xlu0 %381 }
 0x230   :  { %v393_v19 = vrot.slane %v382_v36, 4  ;;  %v397_v37 = vsel %vm394_vm14, %v382_v36, %v396_v29  ;;  %v778_v0 = vrot.slane %v3088_v34, 4 }
 0x231   :  { %v405_v40 = vperm.slane %v397_v37, %v2939_v58 }
 0x232   :  { %v395_v42 = vsel %vm394_vm14, %v393_v19, %v290_v1 }
 0x233   :  { %v401_v44 = vperm.slane %v395_v42, %v2939_v58  ;;  %v431_v45 = vsel %vm394_vm14, %v430_v22, %v405_v40  ;;  %v432_v46 = vrot.slane %v405_v40, 4 }
 0x234   :  { %v437_v57 = vperm.slane %v431_v45, %v2950_v7 }
 0x235   :  { %v419_v49 = vsel %vm394_vm14, %v418_v43, %v401_v44  ;;  %v420_v50 = vrot.slane %v401_v44, 4  ;;  %v433_v28 = vsel %vm394_vm14, %v417_v26, %v432_v46 }
 0x236   :  { %v425_v54 = vperm.slane %v419_v49, %v2950_v7  ;;  %v441_v55 = vperm.slane %v433_v28, %v2950_v7  ;;  %v446_v13 = vrot.slane %v437_v57, 4 }
 0x237   :  { %v421_v59 = vsel %vm394_vm14, %v413_v32, %v420_v50  ;;  %v625_v61 = vpop.permute.xlu0 %624  ;;  %v3120_v8 = vpop.permute.xlu2 %389 }
 0x238   :  { %v429_v1 = vperm.slane %v421_v59, %v2950_v7  ;;  %v448_v2 = vrot.slane %v441_v55, 4  ;;  %v384_v3 = vpop.permute.xlu1 %383  ;;  %v442_v5 = vrot.slane %v425_v54, 4  ;;  %v835_v11 = vsel %vm394_vm14, %v834_v56, %v625_v61 }
 0x239   :  { %v450_v9 = vrot.slane %v384_v3, 4  ;;  %v453_v10 = vsel %vm394_vm14, %v384_v3, %v452_v24  ;;  %v447_v20 = vsel %vm394_vm14, 0.0, %v446_v13  ;;  %v836_v25 = vrot.slane %v625_v61, 4 }
 0x23a   :  { %v444_v14 = vrot.slane %v429_v1, 4  ;;  %v449_v15 = vsel %vm394_vm14, 0.0, %v448_v2  ;;  %v517_v17 = vsel %vm394_vm14, %v448_v2, %v437_v57  ;;  %v3127_v18 = vperm.slane %v453_v10, %v2939_v58 }
 0x23b   :  { %v522_v21 = vrot.slane %v449_v15, 4  ;;  %v451_v23 = vsel %vm394_vm14, %v450_v9, %v3043_v33  ;;  %v3134_v26 = vperm.slane %v517_v17, %v2939_v58  ;;  %v462_v27 = vrot.slane %v3120_v8, 4 }
 0x23c   :  { %v445_v35 = vsel %vm394_vm14, 0.0, %v444_v14  ;;  %v841_v29 = vperm.slane %v835_v11, %v2939_v58  ;;  %v3139_v31 = vperm.slane %v451_v23, %v2939_v58  ;;  %v488_v32 = vrot.slane %v3127_v18, 4 }
 0x23d   :  { %v511_v30 = vrot.slane %v445_v35, 4  ;;  %v837_v36 = vsel %vm394_vm14, %v3076_v12, %v836_v25  ;;  %v443_v39 = vsel %vm394_vm14, 0.0, %v442_v5  ;;  %v523_v22 = vsel %vm394_vm14, %v522_v21, %v447_v20 }
 0x23e   :  { %v845_v33 = vperm.slane %v837_v36, %v2939_v58  ;;  %v846_v19 = vrot.slane %v841_v29, 4  ;;  %v849_v37 = vsel %vm394_vm14, %v841_v29, %v848_v52  ;;  %v506_v43 = vsel %vm394_vm14, %v444_v14, %v425_v54 }
 0x23f   :  { %v857_v40 = vperm.slane %v849_v37, %v2950_v7  ;;  %v623_v42 = vpop.permute.xlu0 %622  ;;  %v512_v44 = vsel %vm394_vm14, %v511_v30, %v443_v39  ;;  %v476_v55 = vrot.slane %v3139_v31, 4  ;;  %v542_v21 = vrot.slane %v3134_v26, 4 }
 0x240   :  { %v847_v45 = vsel %vm394_vm14, %v846_v19, %v829_v51  ;;  %v858_v46 = vrot.slane %v845_v33, 4  ;;  %v861_v12 = vsel %vm394_vm14, %v845_v33, %v860_v48  ;;  %v779_v57 = vsel %vm394_vm14, %v778_v0, %v623_v42 }
 0x241   :  { %v853_v49 = vperm.slane %v847_v45, %v2950_v7  ;;  %v869_v50 = vperm.slane %v861_v12, %v2950_v7  ;;  %v872_v28 = vrot.slane %v857_v40, 4  ;;  %v780_v52 = vrot.slane %v623_v42, 4 }
 0x242   :  { %v859_v54 = vsel %vm394_vm14, %v858_v46, %v3092_v38  ;;  %v785_v56 = vperm.slane %v779_v57, %v2939_v58  ;;  %v510_v51 = vperm.slane %v506_v43, %v2939_v58  ;;  %v516_v1 = vperm.slane %v512_v44, %v2939_v58 }
 0x243   :  { %v3162_v59 = vperm.slane %v859_v54, %v2950_v7  ;;  %v870_v48 = vrot.slane %v853_v49, 4  ;;  %v3165_v13 = vsel %vm394_vm14, 0.0, %v872_v28  ;;  %v3167_v24 = vrot.slane %v869_v50, 4 }
 0x244   :  { %v781_v61 = vsel %vm394_vm14, %v3088_v34, %v780_v52  ;;  %v790_v0 = vrot.slane %v785_v56, 4  ;;  %v527_v38 = vperm.slane %v523_v22, %v2939_v58  ;;  %v1040_v5 = vsel %vm394_vm14, %v872_v28, %v853_v49 }
 0x245   :  { %v871_v2 = vsel %vm394_vm14, 0.0, %v870_v48  ;;  %v874_v3 = vrot.slane %v3162_v59, 4  ;;  %v1045_v9 = vrot.slane %v3165_v13, 4  ;;  %v3179_v10 = vsel %vm394_vm14, 0.0, %v3167_v24 }
 0x246   :  { %v789_v11 = vperm.slane %v781_v61, %v2939_v58  ;;  %v791_v34 = vsel %vm394_vm14, %v790_v0, %v3105_v47  ;;  %v793_v14 = vsel %vm394_vm14, %v785_v56, %v792_v63  ;;  %v530_v20 = vrot.slane %v510_v51, 4 }
 0x247   :  { %v797_v15 = vperm.slane %v791_v34, %v2950_v7  ;;  %v801_v17 = vperm.slane %v793_v14, %v2950_v7  ;;  %v378_v23 = vpop.permute.xlu0 %377  ;;  %v3191_v25 = vperm.slane %v1040_v5, %v2939_v58  ;;  %v543_v39 = vsel %vm394_vm14, %v527_v38, %v542_v21 }
 0x248   :  { %v802_v35 = vrot.slane %v789_v11, 4  ;;  %v805_v29 = vsel %vm394_vm14, %v789_v11, %v804_v53  ;;  %v464_v30 = vrot.slane %v378_v23, 4  ;;  %v531_v33 = vsel %vm394_vm14, %v516_v1, %v530_v20 }
 0x249   :  { %v813_v47 = vperm.slane %v805_v29, %v2950_v7  ;;  %v814_v63 = vrot.slane %v797_v15, 4  ;;  %v816_v36 = vrot.slane %v801_v17, 4  ;;  %v3201_v37 = vperm.slane %v531_v33, %v2950_v7 }
 0x24a   :  { %v803_v19 = vsel %vm394_vm14, %v802_v35, %v3099_v41  ;;  %v463_v22 = vsel %vm394_vm14, %v462_v27, %v378_v23  ;;  %v465_v43 = vsel %vm394_vm14, %v3120_v8, %v464_v30  ;;  %v1056_v44 = vrot.slane %v3179_v10, 4 }
 0x24b   :  { %v3206_v40 = vperm.slane %v803_v19, %v2950_v7  ;;  %v817_v53 = vsel %vm394_vm14, 0.0, %v816_v36  ;;  %v3209_v42 = vrot.slane %v813_v47, 4  ;;  %v815_v41 = vsel %vm394_vm14, 0.0, %v814_v63 }
 0x24c   :  { %v986_v45 = vsel %vm394_vm14, %v816_v36, %v797_v15  ;;  %v3217_v46 = vperm.slane %v543_v39, %v2950_v7  ;;  %v991_v12 = vrot.slane %v817_v53, 4  ;;  %v558_v57 = vrot.slane %v3201_v37, 4 }
 0x24d   :  { %v818_v27 = vrot.slane %v3206_v40, 4  ;;  %v469_v49 = vperm.slane %v463_v22, %v2939_v58  ;;  %v821_v50 = vsel %vm394_vm14, 0.0, %v3209_v42  ;;  %v473_v28 = vperm.slane %v465_v43, %v2939_v58 }
 0x24e   :  { %v556_v8 = vrot.slane %v3217_v46, 4  ;;  %v528_v52 = vrot.slane %v516_v1, 4  ;;  %v3227_v54 = vperm.slane %v986_v45, %v2939_v58  ;;  %v540_v13 = vrot.slane %v527_v38, 4 }
 0x24f   :  { %v474_v56 = vrot.slane %v469_v49, 4  ;;  %v477_v48 = vsel %vm394_vm14, %v469_v49, %v476_v55  ;;  %v486_v5 = vrot.slane %v473_v28, 4  ;;  %v489_v10 = vsel %vm394_vm14, %v473_v28, %v488_v32 }
 0x250   :  { %v557_v61 = vsel %vm394_vm14, %v556_v8, %v3201_v37  ;;  %v485_v0 = vperm.slane %v477_v48, %v2950_v7  ;;  %v497_v11 = vperm.slane %v489_v10, %v2950_v7  ;;  %v529_v55 = vsel %vm394_vm14, %v528_v52, %v510_v51 }
 0x251   :  { %2416 = vmatmul.msk.f32.vlgmr.msrb.gmra.mxu0 %vm1574_vm15, %v557_v61  ;;  %v475_v1 = vsel %vm394_vm14, %v474_v56, %v3139_v31  ;;  %v541_v38 = vsel %vm394_vm14, %v540_v13, %v3134_v26  ;;  %v487_v14 = vsel %vm394_vm14, %v486_v5, %v3127_v18  ;;  %v535_v32 = vperm.slane %v529_v55, %v2950_v7 }
 0x252   :  { %v481_v34 = vperm.slane %v475_v1, %v2950_v7  ;;  %v500_v15 = vrot.slane %v485_v0, 4  ;;  %v3248_v17 = vperm.slane %v487_v14, %v2950_v7  ;;  %v3250_v20 = vrot.slane %v497_v11, 4 }
 0x253   :  { %v547_v31 = vperm.slane %v541_v38, %v2950_v7  ;;  %v1046_v51 = vsel %vm394_vm14, %v1045_v9, %v871_v2  ;;  %v875_v18 = vsel %vm394_vm14, 0.0, %v874_v3  ;;  %v1002_v35 = vrot.slane %v821_v50, 4 }
 0x254   :  { %v498_v21 = vrot.slane %v481_v34, 4  ;;  %v501_v26 = vsel %vm394_vm14, 0.0, %v500_v15  ;;  %v560_v23 = vsel %vm394_vm14, %v500_v15, %v481_v34  ;;  %v502_v29 = vrot.slane %v3248_v17, 4 }
 0x255   :  { %v3262_v30 = vsel %vm394_vm14, 0.0, %v3250_v20  ;;  %v554_v47 = vrot.slane %v535_v32, 4  ;;  %v3265_v63 = vperm.slane %v560_v23, %v2939_v58  ;;  %v565_v2 = vrot.slane %v501_v26, 4 }
 0x256   :  { %v552_v9 = vrot.slane %v547_v31, 4  ;;  %v1050_v36 = vperm.slane %v1046_v51, %v2939_v58  ;;  %v499_v33 = vsel %vm394_vm14, 0.0, %v498_v21  ;;  %v1051_v3 = vsel %vm394_vm14, %v3167_v24, %v3162_v59 }
 0x257   :  { %v1057_v19 = vsel %vm394_vm14, %v1056_v44, %v875_v18  ;;  %v1064_v39 = vrot.slane %v3191_v25, 4  ;;  %v576_v22 = vrot.slane %v3262_v30, 4  ;;  %v1055_v43 = vperm.slane %v1051_v3, %v2939_v58 }
 0x258   :  { %v553_v53 = vsel %vm394_vm14, %v552_v9, %v535_v32  ;;  %v1061_v45 = vperm.slane %v1057_v19, %v2939_v58  ;;  %v1062_v50 = vrot.slane %v1050_v36, 4  ;;  %v819_v8 = vsel %vm394_vm14, 0.0, %v818_v27 }
 0x259   :  { %2410 = vmatmul.msk.f32.vlgmr.msrb.gmra.mxu3 %vm1574_vm15, %v553_v53  ;;  %v1065_v49 = vsel %vm394_vm14, %v1050_v36, %v1064_v39  ;;  %v992_v59 = vsel %vm394_vm14, %v991_v12, %v815_v41  ;;  %v1076_v28 = vrot.slane %v1055_v43, 4  ;;  %v997_v48 = vsel %vm394_vm14, %v3209_v42, %v3206_v40 }
 0x25a   :  { %2417 = vmatpush.xpose.msk.msrb.mxu3 %vm1574_vm15, %v3036_v62  ;;  %v3285_v24 = vperm.slane %v1065_v49, %v2950_v7  ;;  %v1074_v44 = vrot.slane %v1061_v45, 4  ;;  %v996_v52 = vperm.slane %v992_v59, %v2939_v58  ;;  %v1063_v56 = vsel %vm394_vm14, %v1062_v50, %v3191_v25 }
 0x25b   :  { %v1003_v27 = vsel %vm394_vm14, %v1002_v35, %v819_v8  ;;  %v1010_v41 = vrot.slane %v3227_v54, 4  ;;  %v1077_v62 = vsel %vm394_vm14, %v1061_v45, %v1076_v28  ;;  %v1069_v13 = vperm.slane %v1063_v56, %v2950_v7 }
 0x25c   :  { %v1092_v12 = vrot.slane %v3285_v24, 4  ;;  %v1075_v61 = vsel %vm394_vm14, %v1074_v44, %v1055_v43  ;;  %v1085_v0 = vperm.slane %v1077_v62, %v2950_v7  ;;  %v1001_v5 = vperm.slane %v997_v48, %v2939_v58 }
 0x25d   :  { %v1081_v25 = vperm.slane %v1075_v61, %v2950_v7  ;;  %v1007_v40 = vperm.slane %v1003_v27, %v2939_v58  ;;  %v566_v42 = vsel %vm394_vm14, %v565_v2, %v499_v33  ;;  %v1088_v10 = vrot.slane %v1069_v13, 4 }
 0x25e   :  { %2418 = vmatpush.xpose.msk.msrb.mxu3 %vm1574_vm15, %v3033_v60  ;;  %v1011_v1 = vsel %vm394_vm14, %v996_v52, %v1010_v41  ;;  %v1008_v11 = vrot.slane %v996_v52, 4  ;;  %v1093_v55 = vsel %vm394_vm14, %v1085_v0, %v1092_v12  ;;  %v555_v38 = vsel %vm394_vm14, %v547_v31, %v554_v47 }
 0x25f   :  { %v1086_v34 = vrot.slane %v1081_v25, 4  ;;  %v1019_v14 = vperm.slane %v1011_v1, %v2950_v7  ;;  %v1090_v15 = vrot.slane %v1085_v0, 4  ;;  %2429 = vmatpush.xpose.msk.msrb.mxu1 %vm1574_vm15, %v1093_v55  ;;  %v1022_v32 = vrot.slane %v1001_v5, 4  ;;  %v2503_v1 = vpop.permute.xlu2 %2502 }
 0x260   :  { %v1009_v51 = vsel %vm394_vm14, %v1008_v11, %v3227_v54  ;;  %v1020_v21 = vrot.slane %v1007_v40, 4  ;;  %v1089_v26 = vsel %vm394_vm14, %v1081_v25, %v1088_v10  ;;  %v503_v54 = vsel %vm394_vm14, 0.0, %v502_v29  ;;  %v2513_v10 = vpop.permute.xlu0 %2512 }
 0x261   :  { %2413 = vmatmul.msk.f32.vlgmr.msra.gmra.mxu3 %vm1574_vm15, %v555_v38  ;;  %v1087_v60 = vsel %vm394_vm14, %v1086_v34, %v1069_v13  ;;  %v1038_v23 = vrot.slane %v1019_v14, 4  ;;  %v1015_v31 = vperm.slane %v1009_v51, %v2950_v7  ;;  %v1023_v18 = vsel %vm394_vm14, %v1007_v40, %v1022_v32 }
 0x262   :  { %2420 = vmatpush.xpose.msk.msra.mxu0 %vm1574_vm15, %v1087_v60  ;;  %2423 = vmatpush.xpose.msk.msra.mxu3 %vm1574_vm15, %v1089_v26  ;;  %v1021_v35 = vsel %vm394_vm14, %v1020_v21, %v1001_v5  ;;  %v570_v30 = vperm.slane %v566_v42, %v2939_v58  ;;  %v1031_v47 = vperm.slane %v1023_v18, %v2950_v7  ;;  %v584_v19 = vrot.slane %v3265_v63, 4  ;;  %v2508_v5 = vpop.permute.xlu1 %2507 }
 0x263   :  { %v1027_v2 = vperm.slane %v1021_v35, %v2950_v7  ;;  %v1034_v9 = vrot.slane %v1015_v31, 4  ;;  %v571_v36 = vsel %vm394_vm14, %v3250_v20, %v3248_v17  ;;  %v577_v3 = vsel %vm394_vm14, %v576_v22, %v503_v54 }
 0x264   :  { %v575_v33 = vperm.slane %v571_v36, %v2939_v58  ;;  %v582_v39 = vrot.slane %v570_v30, 4  ;;  %v1039_v29 = vsel %vm394_vm14, %v1031_v47, %v1038_v23  ;;  %v581_v45 = vperm.slane %v577_v3, %v2939_v58 }
 0x265   :  { %v1035_v53 = vsel %vm394_vm14, %v1027_v2, %v1034_v9  ;;  %v1032_v43 = vrot.slane %v1027_v2, 4  ;;  %2430 = vmatpush.xpose.msk.msrb.mxu1 %vm1574_vm15, %v1039_v29  ;;  %v585_v17 = vsel %vm394_vm14, %v570_v30, %v584_v19  ;;  %v559_v49 = vsel %vm394_vm14, %v3217_v46, %v558_v57 }
 0x266   :  { %2424 = vmatpush.xpose.msk.msra.mxu3 %vm1574_vm15, %v1035_v53  ;;  %v596_v20 = vrot.slane %v575_v33, 4  ;;  %v583_v22 = vsel %vm394_vm14, %v582_v39, %v3265_v63  ;;  %v593_v8 = vperm.slane %v585_v17, %v2950_v7  ;;  %v594_v59 = vrot.slane %v581_v45, 4 }
 0x267   :  { %v1033_v50 = vsel %vm394_vm14, %v1032_v43, %v1015_v31  ;;  %v1091_v44 = vsel %vm394_vm14, %v1090_v15, %v3285_v24  ;;  %v1036_v52 = vrot.slane %v1031_v47, 4  ;;  %v589_v63 = vperm.slane %v583_v22, %v2950_v7 }
 0x268   :  { %2421 = vmatpush.xpose.msk.msra.mxu0 %vm1574_vm15, %v1033_v50  ;;  %v597_v28 = vsel %vm394_vm14, %v581_v45, %v596_v20  ;;  %v612_v46 = vrot.slane %v593_v8, 4  ;;  %v595_v57 = vsel %vm394_vm14, %v594_v59, %v575_v33  ;;  %v1136_v0 = vrot.slane %v3066_v6, 4 }
 0x269   :  { %2419 = vmatmul.msk.f32.vlgmr.msrb.gmra.mxu3 %vm1574_vm15, %v559_v49  ;;  %v605_v37 = vperm.slane %v597_v28, %v2950_v7  ;;  %v601_v56 = vperm.slane %v595_v57, %v2950_v7  ;;  %v1037_v24 = vsel %vm394_vm14, %v1036_v52, %v1019_v14  ;;  %v608_v41 = vrot.slane %v589_v63, 4 }
 0x26a   :  { %v1192_v25 = vrot.slane %v3069_v16, 4  ;;  %v2510_v40 = vunpack.i.h.bf16 %v2508_v5  ;;  %v2509_v42 = vunpack.i.l.bf16 %v2508_v5  ;;  %v2505_v14 = vunpack.i.h.bf16 %v2503_v1 }
 0x26b   :  { %v613_v48 = vsel %vm394_vm14, %v605_v37, %v612_v46  ;;  %v606_v27 = vrot.slane %v601_v56, 4  ;;  %v609_v12 = vsel %vm394_vm14, %v601_v56, %v608_v41  ;;  %v610_v13 = vrot.slane %v605_v37, 4 }
 0x26c   :  { %2426 = vmatpush.xpose.msk.msrb.mxu0 %vm1574_vm15, %v1091_v44  ;;  %2431 = vmatmul.msk.f32.vlgmr.msrb.gmra.mxu1 %vm1574_vm15, %v613_v48  ;;  %v1134_v11 = vrot.slane %v2510_v40, 4  ;;  %v1137_v55 = vsel %vm394_vm14, %v2510_v40, %v1136_v0  ;;  %v1190_v38 = vrot.slane %v2509_v42, 4  ;;  %v1193_v34 = vsel %vm394_vm14, %v2509_v42, %v1192_v25 }
 0x26d   :  { %v607_v62 = vsel %vm394_vm14, %v606_v27, %v589_v63  ;;  %v611_v61 = vsel %vm394_vm14, %v610_v13, %v593_v8  ;;  %v2504_v15 = vunpack.i.l.bf16 %v2503_v1  ;;  %v1145_v32 = vperm.slane %v1137_v55, %v2939_v58 }
 0x26e   :  { %2422 = vmatmul.msk.f32.vlgmr.msra.gmra.mxu0 %vm1574_vm15, %v607_v62  ;;  %v1135_v51 = vsel %vm394_vm14, %v1134_v11, %v3066_v6  ;;  %v1191_v21 = vsel %vm394_vm14, %v1190_v38, %v3069_v16  ;;  %v2515_v60 = vunpack.i.h.bf16 %v2513_v10  ;;  %v2514_v26 = vunpack.i.l.bf16 %v2513_v10 }
 0x26f   :  { %v1148_v23 = vrot.slane %v2505_v14, 4  ;;  %v1204_v31 = vrot.slane %v2504_v15, 4  ;;  %v1141_v18 = vperm.slane %v1135_v51, %v2939_v58  ;;  %v1201_v35 = vperm.slane %v1193_v34, %v2939_v58 }
 0x270   :  { %2427 = vmatpush.xpose.msk.msrb.mxu0 %vm1574_vm15, %v1037_v24  ;;  %v1172_v54 = vrot.slane %v1145_v32, 4  ;;  %v1197_v30 = vperm.slane %v1191_v21, %v2939_v58  ;;  %v1146_v47 = vrot.slane %v2515_v60, 4  ;;  %v1202_v2 = vrot.slane %v2514_v26, 4 }
 0x271   :  { %2425 = vmatmul.msk.f32.vlgmr.msra.gmra.mxu3 %vm1574_vm15, %v609_v12  ;;  %v1160_v9 = vrot.slane %v1141_v18, 4  ;;  %v1149_v36 = vsel %vm394_vm14, %v2515_v60, %v1148_v23  ;;  %v1205_v6 = vsel %vm394_vm14, %v2514_v26, %v1204_v31  ;;  %v1228_v43 = vrot.slane %v1201_v35, 4 }
 0x272   :  { %v1216_v33 = vrot.slane %v1197_v30, 4  ;;  %v1147_v16 = vsel %vm394_vm14, %v1146_v47, %v2505_v14  ;;  %v1157_v3 = vperm.slane %v1149_v36, %v2939_v58  ;;  %v1203_v19 = vsel %vm394_vm14, %v1202_v2, %v2504_v15 }
 0x273   :  { %v1153_v39 = vperm.slane %v1147_v16, %v2939_v58  ;;  %v1209_v29 = vperm.slane %v1203_v19, %v2939_v58  ;;  %v1213_v53 = vperm.slane %v1205_v6, %v2939_v58 }
 0x274   :  { %v1170_v45 = vrot.slane %v1157_v3, 4  ;;  %v1173_v17 = vsel %vm394_vm14, %v1157_v3, %v1172_v54 }
 0x275   :  { %v1158_v20 = vrot.slane %v1153_v39, 4  ;;  %v1161_v22 = vsel %vm394_vm14, %v1153_v39, %v1160_v9  ;;  %v1181_v49 = vperm.slane %v1173_v17, %v2950_v7  ;;  %v1214_v50 = vrot.slane %v1209_v29, 4 }
 0x276   :  { %2428 = vmatmul.msk.f32.vlgmr.msrb.gmra.mxu0 %vm1574_vm15, %v611_v61  ;;  %v1169_v8 = vperm.slane %v1161_v22, %v2950_v7  ;;  %v1171_v59 = vsel %vm394_vm14, %v1170_v45, %v1145_v32  ;;  %v1217_v44 = vsel %vm394_vm14, %v1209_v29, %v1216_v33  ;;  %v1226_v28 = vrot.slane %v1213_v53, 4 }
 0x277   :  { %v1159_v52 = vsel %vm394_vm14, %v1158_v20, %v1141_v18  ;;  %v1177_v63 = vperm.slane %v1171_v59, %v2950_v7  ;;  %v1188_v37 = vrot.slane %v1181_v49, 4  ;;  %v1215_v46 = vsel %vm394_vm14, %v1214_v50, %v1197_v30 }
 0x278   :  { %v1184_v57 = vrot.slane %v1169_v8, 4  ;;  %v1225_v56 = vperm.slane %v1217_v44, %v2950_v7  ;;  %v1227_v48 = vsel %vm394_vm14, %v1226_v28, %v1201_v35  ;;  %v1229_v24 = vsel %vm394_vm14, %v1213_v53, %v1228_v43 }
 0x279   :  { %v1186_v27 = vrot.slane %v1177_v63, 4  ;;  %v1189_v41 = vsel %vm394_vm14, 0.0, %v1188_v37  ;;  %v1233_v62 = vperm.slane %v1227_v48, %v2950_v7  ;;  %v1237_v12 = vperm.slane %v1229_v24, %v2950_v7 }
 0x27a   :  { %v1185_v13 = vsel %vm394_vm14, 0.0, %v1184_v57  ;;  %v1374_v61 = vrot.slane %v1189_v41, 4  ;;  %v1240_v0 = vrot.slane %v1225_v56, 4  ;;  %v1221_v25 = vperm.slane %v1215_v46, %v2950_v7 }
 0x27b   :  { %v1363_v5 = vrot.slane %v1185_v13, 4  ;;  %v1242_v40 = vrot.slane %v1233_v62, 4  ;;  %v1244_v42 = vrot.slane %v1237_v12, 4  ;;  %v1165_v10 = vperm.slane %v1159_v52, %v2950_v7 }
 0x27c   :  { %v1241_v1 = vsel %vm394_vm14, 0.0, %v1240_v0  ;;  %v1238_v11 = vrot.slane %v1221_v25, 4  ;;  %v1412_v55 = vsel %vm394_vm14, %v1240_v0, %v1221_v25  ;;  %v1187_v38 = vsel %vm394_vm14, 0.0, %v1186_v27 }
 0x27d   :  { %v1245_v34 = vsel %vm394_vm14, 0.0, %v1244_v42  ;;  %v1417_v14 = vrot.slane %v1241_v1, 4  ;;  %v1243_v15 = vsel %vm394_vm14, 0.0, %v1242_v40  ;;  %v1416_v32 = vperm.slane %v1412_v55, %v2939_v58 }
 0x27e   :  { %v1428_v51 = vrot.slane %v1245_v34, 4  ;;  %v1239_v21 = vsel %vm394_vm14, 0.0, %v1238_v11  ;;  %v1423_v60 = vsel %vm394_vm14, %v1244_v42, %v1233_v62  ;;  %v1182_v26 = vrot.slane %v1165_v10, 4 }
 0x27f   :  { %v1418_v23 = vsel %vm394_vm14, %v1417_v14, %v1239_v21  ;;  %v1427_v31 = vperm.slane %v1423_v60, %v2939_v58  ;;  %v1436_v18 = vrot.slane %v1416_v32, 4  ;;  %v1358_v35 = vsel %vm394_vm14, %v1184_v57, %v1165_v10 }
 0x280   :  { %v1422_v54 = vperm.slane %v1418_v23, %v2939_v58  ;;  %v1429_v30 = vsel %vm394_vm14, %v1428_v51, %v1243_v15  ;;  %v1183_v47 = vsel %vm394_vm14, 0.0, %v1182_v26  ;;  %v1362_v2 = vperm.slane %v1358_v35, %v2939_v58 }
 0x281   :  { %v1433_v9 = vperm.slane %v1429_v30, %v2939_v58  ;;  %v1448_v36 = vrot.slane %v1427_v31, 4  ;;  %v1364_v6 = vsel %vm394_vm14, %v1363_v5, %v1183_v47  ;;  %v1369_v33 = vsel %vm394_vm14, %v1188_v37, %v1177_v63 }
 0x282   :  { %v1434_v16 = vrot.slane %v1422_v54, 4  ;;  %v1368_v3 = vperm.slane %v1364_v6, %v2939_v58  ;;  %v1373_v19 = vperm.slane %v1369_v33, %v2939_v58  ;;  %v1375_v39 = vsel %vm394_vm14, %v1374_v61, %v1187_v38  ;;  %v367_v6 = vpop.f32.mrf.mxu2 }
 0x283   :  { %v1446_v29 = vrot.slane %v1433_v9, 4  ;;  %v1379_v53 = vperm.slane %v1375_v39, %v2939_v58  ;;  %v1437_v43 = vsel %vm394_vm14, %v1422_v54, %v1436_v18  ;;  %v1449_v45 = vsel %vm394_vm14, %v1433_v9, %v1448_v36 }
 0x284   :  { %v1435_v17 = vsel %vm394_vm14, %v1434_v16, %v1416_v32  ;;  %v1380_v20 = vrot.slane %v1368_v3, 4  ;;  %v1445_v22 = vperm.slane %v1437_v43, %v2950_v7  ;;  %v1457_v49 = vperm.slane %v1449_v45, %v2950_v7  ;;  %v370_v32 = vpop.f32.mrf.mxu3 }
 0x285   :  { %v1441_v50 = vperm.slane %v1435_v17, %v2950_v7  ;;  %v1447_v8 = vsel %vm394_vm14, %v1446_v29, %v1427_v31  ;;  %v1392_v59 = vrot.slane %v1379_v53, 4  ;;  %v1382_v44 = vrot.slane %v1362_v2, 4 }
 0x286   :  { %v1453_v28 = vperm.slane %v1447_v8, %v2950_v7  ;;  %v1381_v52 = vsel %vm394_vm14, %v1380_v20, %v1362_v2  ;;  %v1462_v63 = vrot.slane %v1457_v49, 4  ;;  %v1394_v37 = vrot.slane %v1373_v19, 4 }
 0x287   :  { %v1460_v46 = vrot.slane %v1441_v50, 4  ;;  %v1387_v57 = vperm.slane %v1381_v52, %v2950_v7  ;;  %v1393_v56 = vsel %vm394_vm14, %v1392_v59, %v1373_v19  ;;  %v1383_v48 = vsel %vm394_vm14, %v1368_v3, %v1382_v44 }
 0x288   :  { %v1458_v24 = vrot.slane %v1453_v28, 4  ;;  %v1399_v27 = vperm.slane %v1393_v56, %v2950_v7  ;;  %v1463_v41 = vsel %vm394_vm14, %v1462_v63, %v1445_v22  ;;  %v1391_v62 = vperm.slane %v1383_v48, %v2950_v7 }
 0x289   :  { %v1461_v12 = vsel %vm394_vm14, %v1453_v28, %v1460_v46  ;;  %1959 = vmatpush.msra.mxu0 %v1463_v41  ;;  %v1406_v13 = vrot.slane %v1387_v57, 4  ;;  %v1395_v61 = vsel %vm394_vm14, %v1379_v53, %v1394_v37  ;;  %v1464_v0 = vrot.slane %v1445_v22, 4 }
 0x28a   :  { %v1459_v25 = vsel %vm394_vm14, %v1458_v24, %v1441_v50  ;;  %v1404_v5 = vrot.slane %v1399_v27, 4  ;;  %1936 = vmatpush.msrb.mxu3 %v1461_v12  ;;  %v1403_v40 = vperm.slane %v1395_v61, %v2950_v7  ;;  %v1410_v42 = vrot.slane %v1391_v62, 4 }
 0x28b   :  { %1913 = vmatpush.msrb.mxu2 %v1459_v25  ;;  %v1407_v10 = vsel %vm394_vm14, %v1399_v27, %v1406_v13  ;;  %v1465_v1 = vsel %vm394_vm14, %v1457_v49, %v1464_v0  ;;  %v3461_v33 = vadd.f32 %v3063_v4, %v370_v32  ;;  %v3464_v16 = vadd.f32 %v3063_v4, %v367_v6 }
 0x28c   :  { %v1405_v11 = vsel %vm394_vm14, %v1404_v5, %v1387_v57  ;;  %1937 = vmatpush.msrb.mxu3 %v1407_v10  ;;  %v1408_v55 = vrot.slane %v1403_v40, 4  ;;  %1982 = vmatpush.msra.mxu1 %v1465_v1  ;;  %v1411_v38 = vsel %vm394_vm14, %v1403_v40, %v1410_v42 }
 0x28d   :  { %1914 = vmatpush.msrb.mxu2 %v1405_v11  ;;  %v2516_v3 = vpack.i.bf16 %v3464_v16, %v3461_v33 }
 0x28e   :  { %v1409_v34 = vsel %vm394_vm14, %v1408_v55, %v1391_v62  ;;  %1983 = vmatpush.msra.mxu1 %v1411_v38  ;;  %v1248_v55 = vrot.slane %v3464_v16, 4 }
 0x28f   :  { %1960 = vmatpush.msra.mxu0 %v1409_v34 }
 0x2ce   :  { %v1659_v14 = vpop.f32.mrf.mxu0 }
 0x2cf   :  { %v1814_v15 = vsel %vm1807_vm1, %v1659_v14, -inf }
 0x2d0   :  { %1815 = vmax.xlane.f32.xlu2 %v1814_v15 }
 0x2dc   :  { %v1601_v51 = vpop.f32.mrf.mxu3 }
 0x2dd   :  { %v1808_v21 = vsel %vm1807_vm1, %v1601_v51, -inf }
 0x2de   :  { %1809 = vmax.xlane.f32.xlu1 %v1808_v21 }
 0x2e4   :  { %v1630_v60 = vpop.f32.mrf.mxu3 }
 0x2e5   :  { %v1811_v9 = vsel %vm1807_vm1, %v1630_v60, -inf }
 0x2e9   :  { %v3452_v18 = vpop.f32.mrf.mxu1 }
 0x2ea   :  { %v1829_v47 = vsel %vm1807_vm1, %v3452_v18, -inf }
 0x2eb   :  { %v1717_v23 = vpop.f32.mrf.mxu0 }
 0x2ec   :  { %v1688_v26 = vpop.f32.mrf.mxu3  ;;  %v1820_v31 = vsel %vm1807_vm1, %v1717_v23, -inf }
 0x2ed   :  { %1821 = vmax.xlane.f32.xlu0 %v1820_v31  ;;  %v1817_v36 = vsel %vm1807_vm1, %v1688_v26, -inf }
 0x2f3   :  { %v1775_v54 = vpop.f32.mrf.mxu0 }
 0x2f4   :  { %v1746_v35 = vpop.f32.mrf.mxu3  ;;  %v1826_v2 = vsel %vm1807_vm1, %v1775_v54, -inf }
 0x2f5   :  { %v1823_v30 = vsel %vm1807_vm1, %v1746_v35, -inf  ;;  %1830 = vmax.xlane.f32.xlu0 %v1829_v47  ;;  %1827 = vmax.xlane.f32.xlu1 %v1826_v2 }
 0x2f6   :  { %1824 = vmax.xlane.f32.xlu2 %v1823_v30 }
 0x2fd   :  { %1812 = vmax.xlane.f32.xlu0 %v1811_v9  ;;  %1818 = vmax.xlane.f32.xlu1 %v1817_v36 }
 0x30e   :  { %2517 = vrot.lane.b32.xlu2 %v2516_v3, %s2771_s17 }
 0x311   :  { %2522 = vrot.lane.b32.xlu0 %v2516_v3, %s2770_s1 }
 0x316   :  { %2527 = vrot.lane.b32.xlu1 %v2516_v3, %s2772_s18 }
 0x343   :  { %v1816_v19 = vpop.xlane.xlu2 %1815 }
 0x344   :  { %v1834_v39 = vsub.f32 %v1659_v14, %v1816_v19 }
 0x346   :  { %v1844_v29 = vmul.f32 1.442695, %v1834_v39 }
 0x348   :  { %2547 = vpow2.f32 %v1844_v29 }
 0x34e   :  { %v3471_v53 = vpop.eup %2547 }
 0x34f   :  { %v1862_v43 = vsel %vm1807_vm1, %v3471_v53, 0.0 }
 0x350   :  { %1863 = vadd.xlane.f32.xlu1 %v1862_v43 }
 0x351   :  { %v1810_v4 = vpop.xlane.xlu1 %1809 }
 0x352   :  { %v1832_v45 = vsub.f32 %v1601_v51, %v1810_v4  ;;  %v1304_v51 = vrot.slane %v3461_v33, 4 }
 0x354   :  { %v1840_v17 = vmul.f32 1.442695, %v1832_v45 }
 0x356   :  { %2549 = vpow2.f32 %v1840_v17 }
 0x35c   :  { %v3475_v20 = vpop.eup %2549 }
 0x35d   :  { %v1856_v22 = vsel %vm1807_vm1, %v3475_v20, 0.0 }
 0x35e   :  { %1857 = vadd.xlane.f32.xlu2 %v1856_v22 }
 0x360   :  { %v1822_v49 = vpop.xlane.xlu0 %1821 }
 0x361   :  { %v1836_v56 = vsub.f32 %v1717_v23, %v1822_v49 }
 0x363   :  { %v1848_v62 = vmul.f32 1.442695, %v1836_v56 }
 0x368   :  { %v1831_v8 = vpop.xlane.xlu0 %1830  ;;  %v1828_v44 = vpop.xlane.xlu1 %1827 }
 0x369   :  { %v1825_v50 = vpop.xlane.xlu2 %1824  ;;  %v1838_v24 = vsub.f32 %v1775_v54, %v1828_v44  ;;  %v1839_v13 = vsub.f32 %v3452_v18, %v1831_v8 }
 0x36a   :  { %v1837_v59 = vsub.f32 %v1746_v35, %v1825_v50 }
 0x36b   :  { %v1852_v12 = vmul.f32 1.442695, %v1838_v24  ;;  %v1854_v40 = vmul.f32 1.442695, %v1839_v13 }
 0x36c   :  { %v1850_v28 = vmul.f32 1.442695, %v1837_v59 }
 0x36e   :  { %2551 = vpow2.f32 %v1850_v28 }
 0x370   :  { %v1813_v52 = vpop.xlane.xlu0 %1812  ;;  %v1819_v63 = vpop.xlane.xlu1 %1818 }
 0x371   :  { %v1833_v37 = vsub.f32 %v1630_v60, %v1813_v52  ;;  %v1835_v46 = vsub.f32 %v1688_v26, %v1819_v63  ;;  %v2518_v1 = vpop.permute.xlu2 %2517 }
 0x372   :  { %v2520_v15 = vunpack.i.h.bf16 %v2518_v1  ;;  %v2519_v32 = vunpack.i.l.bf16 %v2518_v1 }
 0x373   :  { %v1842_v48 = vmul.f32 1.442695, %v1833_v37  ;;  %v1846_v27 = vmul.f32 1.442695, %v1835_v46 }
 0x374   :  { %v3479_v57 = vpop.eup %2551  ;;  %v1260_v30 = vrot.slane %v2520_v15, 4  ;;  %v1316_v47 = vrot.slane %v2519_v32, 4 }
 0x375   :  { %v1871_v41 = vsel %vm1807_vm1, %v3479_v57, 0.0  ;;  %2553 = vpow2.f32 %v1842_v48 }
 0x376   :  { %1872 = vadd.xlane.f32.xlu1 %v1871_v41  ;;  %2555 = vpow2.f32 %v1846_v27 }
 0x377   :  { %2557 = vpow2.f32 %v1848_v62 }
 0x378   :  { %2559 = vpow2.f32 %v1852_v12 }
 0x379   :  { %2561 = vpow2.f32 %v1854_v40 }
 0x37b   :  { %v3484_v61 = vpop.eup %2553 }
 0x37c   :  { %v3486_v0 = vpop.eup %2555  ;;  %v1859_v25 = vsel %vm1807_vm1, %v3484_v61, 0.0 }
 0x37d   :  { %v1865_v5 = vsel %vm1807_vm1, %v3486_v0, 0.0  ;;  %1860 = vadd.xlane.f32.xlu0 %v1859_v25  ;;  %v3492_v42 = vpop.eup %2557 }
 0x37e   :  { %1866 = vadd.xlane.f32.xlu2 %v1865_v5  ;;  %v3494_v10 = vpop.eup %2559  ;;  %v1868_v14 = vsel %vm1807_vm1, %v3492_v42, 0.0 }
 0x37f   :  { %v1874_v21 = vsel %vm1807_vm1, %v3494_v10, 0.0  ;;  %v3504_v18 = vpop.eup %2561 }
 0x380   :  { %v1877_v29 = vsel %vm1807_vm1, %v3504_v18, 0.0 }
 0x383   :  { %v2523_v11 = vpop.permute.xlu0 %2522 }
 0x384   :  { %v2525_v38 = vunpack.i.h.bf16 %v2523_v11  ;;  %v2524_v34 = vunpack.i.l.bf16 %v2523_v11 }
 0x385   :  { %1869 = vadd.xlane.f32.xlu0 %v1868_v14 }
 0x386   :  { %v1246_v60 = vrot.slane %v2525_v38, 4  ;;  %v1249_v26 = vsel %vm394_vm14, %v2525_v38, %v1248_v55  ;;  %v1302_v23 = vrot.slane %v2524_v34, 4  ;;  %1875 = vadd.xlane.f32.xlu2 %v1874_v21  ;;  %v1305_v31 = vsel %vm394_vm14, %v2524_v34, %v1304_v51 }
 0x387   :  { %v1257_v2 = vperm.slane %v1249_v26, %v2939_v58  ;;  %v1313_v6 = vperm.slane %v1305_v31, %v2939_v58 }
 0x388   :  { %v1247_v35 = vsel %vm394_vm14, %v1246_v60, %v3464_v16  ;;  %v1303_v54 = vsel %vm394_vm14, %v1302_v23, %v3461_v33  ;;  %v2528_v9 = vpop.permute.xlu1 %2527 }
 0x389   :  { %v1253_v36 = vperm.slane %v1247_v35, %v2939_v58  ;;  %v2530_v3 = vunpack.i.h.bf16 %v2528_v9  ;;  %v2529_v19 = vunpack.i.l.bf16 %v2528_v9  ;;  %v1309_v39 = vperm.slane %v1303_v54, %v2939_v58 }
 0x38a   :  { %v1284_v45 = vrot.slane %v1257_v2, 4  ;;  %v1340_v50 = vrot.slane %v1313_v6, 4 }
 0x38b   :  { %v1258_v16 = vrot.slane %v2530_v3, 4  ;;  %v1261_v43 = vsel %vm394_vm14, %v2530_v3, %v1260_v30  ;;  %v1314_v33 = vrot.slane %v2529_v19, 4  ;;  %v1317_v4 = vsel %vm394_vm14, %v2529_v19, %v1316_v47 }
 0x38c   :  { %v1269_v17 = vperm.slane %v1261_v43, %v2939_v58  ;;  %v1325_v22 = vperm.slane %v1317_v4, %v2939_v58  ;;  %v1272_v49 = vrot.slane %v1253_v36, 4  ;;  %v1328_v37 = vrot.slane %v1309_v39, 4 }
 0x38d   :  { %1878 = vadd.xlane.f32.xlu0 %v1877_v29  ;;  %v1259_v8 = vsel %vm394_vm14, %v1258_v16, %v2520_v15  ;;  %v1315_v59 = vsel %vm394_vm14, %v1314_v33, %v2519_v32 }
 0x38e   :  { %v1265_v44 = vperm.slane %v1259_v8, %v2939_v58  ;;  %v1282_v28 = vrot.slane %v1269_v17, 4  ;;  %v1285_v52 = vsel %vm394_vm14, %v1269_v17, %v1284_v45  ;;  %v1321_v63 = vperm.slane %v1315_v59, %v2939_v58 }
 0x38f   :  { %v1293_v46 = vperm.slane %v1285_v52, %v2950_v7  ;;  %v1338_v56 = vrot.slane %v1325_v22, 4  ;;  %v1341_v48 = vsel %vm394_vm14, %v1325_v22, %v1340_v50 }
 0x390   :  { %v1270_v24 = vrot.slane %v1265_v44, 4  ;;  %v1273_v27 = vsel %vm394_vm14, %v1265_v44, %v1272_v49  ;;  %v1283_v41 = vsel %vm394_vm14, %v1282_v28, %v1257_v2  ;;  %v1326_v62 = vrot.slane %v1321_v63, 4 }
 0x391   :  { %v1281_v12 = vperm.slane %v1273_v27, %v2950_v7  ;;  %v1289_v13 = vperm.slane %v1283_v41, %v2950_v7  ;;  %v1300_v25 = vrot.slane %v1293_v46, 4  ;;  %v1329_v5 = vsel %vm394_vm14, %v1321_v63, %v1328_v37 }
 0x392   :  { %v1271_v40 = vsel %vm394_vm14, %v1270_v24, %v1253_v36  ;;  %v1327_v1 = vsel %vm394_vm14, %v1326_v62, %v1309_v39  ;;  %v1337_v11 = vperm.slane %v1329_v5, %v2950_v7  ;;  %v1339_v55 = vsel %vm394_vm14, %v1338_v56, %v1313_v6 }
 0x393   :  { %v1277_v38 = vperm.slane %v1271_v40, %v2950_v7  ;;  %v1296_v34 = vrot.slane %v1281_v12, 4  ;;  %v1298_v14 = vrot.slane %v1289_v13, 4  ;;  %v1301_v15 = vsel %vm394_vm14, 0.0, %v1300_v25 }
 0x394   :  { %v1333_v32 = vperm.slane %v1327_v1, %v2950_v7  ;;  %v1345_v51 = vperm.slane %v1339_v55, %v2950_v7  ;;  %v1349_v21 = vperm.slane %v1341_v48, %v2950_v7  ;;  %v1352_v60 = vrot.slane %v1337_v11, 4 }
 0x395   :  { %v1297_v26 = vsel %vm394_vm14, 0.0, %v1296_v34  ;;  %v1482_v23 = vrot.slane %v1301_v15, 4  ;;  %v1294_v31 = vrot.slane %v1277_v38, 4  ;;  %v1299_v35 = vsel %vm394_vm14, 0.0, %v1298_v14 }
 0x396   :  { %v1353_v54 = vsel %vm394_vm14, 0.0, %v1352_v60  ;;  %v1354_v30 = vrot.slane %v1345_v51, 4  ;;  %v1356_v47 = vrot.slane %v1349_v21, 4  ;;  %v1350_v2 = vrot.slane %v1333_v32, 4 }
 0x397   :  { %v1525_v9 = vrot.slane %v1353_v54, 4  ;;  %v1520_v36 = vsel %vm394_vm14, %v1352_v60, %v1333_v32  ;;  %v1295_v6 = vsel %vm394_vm14, 0.0, %v1294_v31  ;;  %v1466_v3 = vsel %vm394_vm14, %v1296_v34, %v1277_v38 }
 0x398   :  { %v1357_v19 = vsel %vm394_vm14, 0.0, %v1356_v47  ;;  %v1531_v39 = vsel %vm394_vm14, %v1356_v47, %v1345_v51  ;;  %v1351_v29 = vsel %vm394_vm14, 0.0, %v1350_v2  ;;  %v1355_v16 = vsel %vm394_vm14, 0.0, %v1354_v30 }
 0x399   :  { %v1536_v43 = vrot.slane %v1357_v19, 4  ;;  %v1524_v33 = vperm.slane %v1520_v36, %v2939_v58  ;;  %v1526_v4 = vsel %vm394_vm14, %v1525_v9, %v1351_v29  ;;  %v1535_v45 = vperm.slane %v1531_v39, %v2939_v58 }
 0x39a   :  { %v1530_v17 = vperm.slane %v1526_v4, %v2939_v58  ;;  %v1470_v22 = vperm.slane %v1466_v3, %v2939_v58  ;;  %v1471_v49 = vrot.slane %v1297_v26, 4  ;;  %v1477_v50 = vsel %vm394_vm14, %v1300_v25, %v1289_v13 }
 0x39b   :  { %v1537_v8 = vsel %vm394_vm14, %v1536_v43, %v1355_v16  ;;  %v1544_v59 = vrot.slane %v1524_v33, 4  ;;  %v1556_v44 = vrot.slane %v1535_v45, 4  ;;  %v1481_v28 = vperm.slane %v1477_v50, %v2939_v58 }
 0x39c   :  { %v1541_v52 = vperm.slane %v1537_v8, %v2939_v58  ;;  %v1542_v63 = vrot.slane %v1530_v17, 4  ;;  %v1472_v37 = vsel %vm394_vm14, %v1471_v49, %v1295_v6  ;;  %v1483_v46 = vsel %vm394_vm14, %v1482_v23, %v1299_v35 }
 0x39d   :  { %v1545_v56 = vsel %vm394_vm14, %v1530_v17, %v1544_v59  ;;  %v1476_v48 = vperm.slane %v1472_v37, %v2939_v58  ;;  %v1487_v24 = vperm.slane %v1483_v46, %v2939_v58  ;;  %v1490_v27 = vrot.slane %v1470_v22, 4 }
 0x39e   :  { %v1553_v41 = vperm.slane %v1545_v56, %v2950_v7  ;;  %v1557_v62 = vsel %vm394_vm14, %v1541_v52, %v1556_v44  ;;  %v1543_v12 = vsel %vm394_vm14, %v1542_v63, %v1524_v33  ;;  %v1554_v13 = vrot.slane %v1541_v52, 4 }
 0x39f   :  { %v1565_v25 = vperm.slane %v1557_v62, %v2950_v7  ;;  %v1549_v5 = vperm.slane %v1543_v12, %v2950_v7  ;;  %v1491_v40 = vsel %vm394_vm14, %v1476_v48, %v1490_v27  ;;  %v1502_v1 = vrot.slane %v1481_v28, 4 }
 0x3a0   :  { %v1555_v11 = vsel %vm394_vm14, %v1554_v13, %v1535_v45  ;;  %v1499_v55 = vperm.slane %v1491_v40, %v2950_v7  ;;  %v1572_v38 = vrot.slane %v1553_v41, 4  ;;  %v1488_v34 = vrot.slane %v1476_v48, 4 }
 0x3a1   :  { %v1570_v14 = vrot.slane %v1565_v25, 4  ;;  %v1561_v15 = vperm.slane %v1555_v11, %v2950_v7  ;;  %v1503_v32 = vsel %vm394_vm14, %v1487_v24, %v1502_v1  ;;  %v1500_v51 = vrot.slane %v1487_v24, 4 }
 0x3a2   :  { %v1511_v21 = vperm.slane %v1503_v32, %v2950_v7  ;;  %v1573_v60 = vsel %vm394_vm14, %v1565_v25, %v1572_v38  ;;  %v1489_v26 = vsel %vm394_vm14, %v1488_v34, %v1470_v22  ;;  %v1568_v23 = vrot.slane %v1549_v5, 4 }
 0x3a3   :  { %v1571_v31 = vsel %vm394_vm14, %v1570_v14, %v1553_v41  ;;  %v1566_v35 = vrot.slane %v1561_v15, 4  ;;  %2074 = vmatpush.msrb.mxu1 %v1573_v60  ;;  %v1495_v54 = vperm.slane %v1489_v26, %v2950_v7  ;;  %v1501_v30 = vsel %vm394_vm14, %v1500_v51, %v1481_v28 }
 0x3a4   :  { %2051 = vmatpush.msrb.mxu0 %v1571_v31  ;;  %v1516_v47 = vrot.slane %v1511_v21, 4  ;;  %v1507_v2 = vperm.slane %v1501_v30, %v2950_v7  ;;  %v1569_v9 = vsel %vm394_vm14, %v1561_v15, %v1568_v23  ;;  %v1518_v36 = vrot.slane %v1499_v55, 4 }
 0x3a5   :  { %v1567_v6 = vsel %vm394_vm14, %v1566_v35, %v1549_v5  ;;  %2028 = vmatpush.msra.mxu3 %v1569_v9  ;;  %v1514_v3 = vrot.slane %v1495_v54, 4 }
 0x3a6   :  { %2005 = vmatpush.msra.mxu2 %v1567_v6  ;;  %v1517_v19 = vsel %vm394_vm14, %v1516_v47, %v1499_v55  ;;  %v1512_v39 = vrot.slane %v1507_v2, 4  ;;  %v1519_v29 = vsel %vm394_vm14, %v1511_v21, %v1518_v36 }
 0x3a7   :  { %2052 = vmatpush.msrb.mxu0 %v1517_v19  ;;  %2075 = vmatpush.msrb.mxu1 %v1519_v29  ;;  %v1515_v16 = vsel %vm394_vm14, %v1507_v2, %v1514_v3 }
 0x3a8   :  { %v1513_v43 = vsel %vm394_vm14, %v1512_v39, %v1495_v54  ;;  %2029 = vmatpush.msra.mxu3 %v1515_v16 }
 0x3a9   :  { %2006 = vmatpush.msra.mxu2 %v1513_v43 }
 0x3c3   :  { %v1864_v33 = vpop.xlane.xlu1 %1863 }
 0x3c4   :  { %2563 = vrcp.f32 %v1864_v33 }
 0x3ca   :  { %v2564_v4 = vpop.eup %2563 }
 0x3cb   :  { %v1890_v45 = vmul.f32 %v2564_v4, %v3471_v53 }
 0x3cd   :  { %2434 = vmatmul.msk.f32.vlgmr.msra.gmra.mxu0 %vm1807_vm1, %v1890_v45 }
 0x3d1   :  { %v1858_v17 = vpop.xlane.xlu2 %1857 }
 0x3d2   :  { %2565 = vrcp.f32 %v1858_v17 }
 0x3d8   :  { %v2566_v22 = vpop.eup %2565 }
 0x3d9   :  { %v1888_v49 = vmul.f32 %v2566_v22, %v3475_v20 }
 0x3db   :  { %2432 = vmatmul.msk.f32.vlgmr.msrb.gmra.mxu2 %vm1807_vm1, %v1888_v49 }
 0x3e9   :  { %v1873_v59 = vpop.xlane.xlu1 %1872 }
 0x3f0   :  { %v1861_v50 = vpop.xlane.xlu0 %1860 }
 0x3f1   :  { %v1867_v8 = vpop.xlane.xlu2 %1866  ;;  %2567 = vrcp.f32 %v1861_v50 }
 0x3f2   :  { %2569 = vrcp.f32 %v1867_v8 }
 0x3f3   :  { %2571 = vrcp.f32 %v1873_v59 }
 0x3f7   :  { %v2568_v44 = vpop.eup %2567 }
 0x3f8   :  { %v2570_v28 = vpop.eup %2569  ;;  %v1889_v52 = vmul.f32 %v2568_v44, %v3484_v61  ;;  %v1870_v53 = vpop.xlane.xlu0 %1869 }
 0x3f9   :  { %v1891_v63 = vmul.f32 %v2570_v28, %v3486_v0  ;;  %v1876_v37 = vpop.xlane.xlu2 %1875  ;;  %2573 = vrcp.f32 %v1870_v53  ;;  %v2572_v20 = vpop.eup %2571 }
 0x3fa   :  { %2575 = vrcp.f32 %v1876_v37  ;;  %2433 = vmatmul.msk.f32.vlgmr.msrb.gmra.mxu3 %vm1807_vm1, %v1889_v52  ;;  %v1893_v48 = vmul.f32 %v2572_v20, %v3479_v57 }
 0x3fb   :  { %2435 = vmatmul.msk.f32.vlgmr.msra.gmra.mxu1 %vm1807_vm1, %v1891_v63 }
 0x3ff   :  { %v2574_v46 = vpop.eup %2573 }
 0x400   :  { %v2576_v56 = vpop.eup %2575  ;;  %v1892_v24 = vmul.f32 %v2574_v46, %v3492_v42  ;;  %v1879_v27 = vpop.xlane.xlu0 %1878 }
 0x401   :  { %v1894_v61 = vmul.f32 %v2576_v56, %v3494_v10  ;;  %2577 = vrcp.f32 %v1879_v27 }
 0x402   :  { %2436 = vmatmul.msk.f32.vlgmr.msra.gmra.mxu2 %vm1807_vm1, %v1892_v24  ;;  %2437 = vmatmul.msk.f32.vlgmr.msra.gmra.mxu3 %vm1807_vm1, %v1893_v48 }
 0x403   :  { %2438 = vmatmul.msk.f32.vlgmr.msrb.gmra.mxu0 %vm1807_vm1, %v1894_v61 }
 0x407   :  { %v2578_v0 = vpop.eup %2577 }
 0x408   :  { %v1895_v41 = vmul.f32 %v2578_v0, %v3504_v18 }
 0x40a   :  { %2439 = vmatmul.msk.f32.vlgmr.msrb.gmra.mxu1 %vm1807_vm1, %v1895_v41 }
 0x44a   :  { %v1962_v62 = vpop.f32.mrf.mxu0 }
 0x44b   :  { %v2080_v57 = vrot.slane %v1962_v62, 4 }
 0x45e   :  { %v1916_v12 = vpop.f32.mrf.mxu2 }
 0x45f   :  { %v2082_v13 = vrot.slane %v1916_v12, 4  ;;  %v2081_v42 = vsel %vm394_vm14, %v2080_v57, %v1916_v12 }
 0x460   :  { %v2087_v5 = vperm.slane %v2081_v42, %v2939_v58 }
 0x461   :  { %v2083_v10 = vsel %vm394_vm14, %v1962_v62, %v2082_v13 }
 0x462   :  { %v2091_v1 = vperm.slane %v2083_v10, %v2939_v58  ;;  %v2106_v38 = vrot.slane %v2087_v5, 4 }
 0x464   :  { %v2118_v15 = vrot.slane %v2091_v1, 4 }
 0x478   :  { %v1985_v25 = vpop.f32.mrf.mxu1 }
 0x479   :  { %v2092_v40 = vrot.slane %v1985_v25, 4 }
 0x47d   :  { %v1939_v11 = vpop.f32.mrf.mxu3 }
 0x47e   :  { %v2093_v55 = vsel %vm394_vm14, %v2092_v40, %v1939_v11  ;;  %v2094_v18 = vrot.slane %v1939_v11, 4 }
 0x47f   :  { %v2099_v34 = vperm.slane %v2093_v55, %v2939_v58 }
 0x480   :  { %v2095_v14 = vsel %vm394_vm14, %v1985_v25, %v2094_v18  ;;  %v2054_v26 = vpop.f32.mrf.mxu0 }
 0x481   :  { %v2103_v32 = vperm.slane %v2095_v14, %v2939_v58  ;;  %v2104_v51 = vrot.slane %v2099_v34, 4  ;;  %v2107_v21 = vsel %vm394_vm14, %v2099_v34, %v2106_v38  ;;  %v2136_v9 = vrot.slane %v2054_v26, 4 }
 0x482   :  { %v2115_v60 = vperm.slane %v2107_v21, %v2950_v7 }
 0x483   :  { %v2105_v23 = vsel %vm394_vm14, %v2104_v51, %v2087_v5  ;;  %v2116_v31 = vrot.slane %v2103_v32, 4  ;;  %v2119_v35 = vsel %vm394_vm14, %v2103_v32, %v2118_v15 }
 0x484   :  { %v2111_v54 = vperm.slane %v2105_v23, %v2950_v7  ;;  %v2127_v30 = vperm.slane %v2119_v35, %v2950_v7  ;;  %v2130_v47 = vrot.slane %v2115_v60, 4 }
 0x485   :  { %v2117_v2 = vsel %vm394_vm14, %v2116_v31, %v2091_v1  ;;  %v2008_v36 = vpop.f32.mrf.mxu2  ;;  %v2031_v29 = vpop.f32.mrf.mxu3 }
 0x486   :  { %v2123_v6 = vperm.slane %v2117_v2, %v2950_v7  ;;  %v2128_v3 = vrot.slane %v2111_v54, 4  ;;  %v2131_v19 = vsel %vm394_vm14, 0.0, %v2130_v47  ;;  %v2134_v39 = vrot.slane %v2127_v30, 4 }
 0x487   :  { %v2192_v16 = vsel %vm394_vm14, %v2130_v47, %v2111_v54  ;;  %v2197_v43 = vrot.slane %v2131_v19, 4  ;;  %v2137_v33 = vsel %vm394_vm14, %v2136_v9, %v2008_v36  ;;  %v2138_v4 = vrot.slane %v2008_v36, 4  ;;  %v2077_v45 = vpop.f32.mrf.mxu1 }
 0x488   :  { %v2129_v17 = vsel %vm394_vm14, 0.0, %v2128_v3  ;;  %v2132_v22 = vrot.slane %v2123_v6, 4  ;;  %v2135_v49 = vsel %vm394_vm14, 0.0, %v2134_v39  ;;  %v2196_v50 = vperm.slane %v2192_v16, %v2939_v58 }
 0x489   :  { %v2208_v8 = vrot.slane %v2135_v49, 4  ;;  %v2139_v59 = vsel %vm394_vm14, %v2054_v26, %v2138_v4  ;;  %v2143_v44 = vperm.slane %v2137_v33, %v2939_v58  ;;  %v2150_v28 = vrot.slane %v2031_v29, 4 }
 0x48a   :  { %v2147_v52 = vperm.slane %v2139_v59, %v2939_v58  ;;  %v2148_v53 = vrot.slane %v2077_v45, 4  ;;  %v2133_v63 = vsel %vm394_vm14, 0.0, %v2132_v22  ;;  %v2198_v37 = vsel %vm394_vm14, %v2197_v43, %v2129_v17 }
 0x48b   :  { %v2162_v20 = vrot.slane %v2143_v44, 4  ;;  %v2151_v46 = vsel %vm394_vm14, %v2077_v45, %v2150_v28  ;;  %v2202_v56 = vperm.slane %v2198_v37, %v2939_v58  ;;  %v2203_v48 = vsel %vm394_vm14, %v2134_v39, %v2123_v6 }
 0x48c   :  { %v2174_v24 = vrot.slane %v2147_v52, 4  ;;  %v2149_v27 = vsel %vm394_vm14, %v2148_v53, %v2031_v29  ;;  %v2159_v61 = vperm.slane %v2151_v46, %v2939_v58  ;;  %v2207_v0 = vperm.slane %v2203_v48, %v2939_v58 }
 0x48d   :  { %v2155_v41 = vperm.slane %v2149_v27, %v2939_v58  ;;  %v2209_v62 = vsel %vm394_vm14, %v2208_v8, %v2133_v63  ;;  %v2216_v12 = vrot.slane %v2196_v50, 4  ;;  %v2214_v57 = vrot.slane %v2202_v56, 4 }
 0x48e   :  { %v2172_v13 = vrot.slane %v2159_v61, 4  ;;  %v2175_v42 = vsel %vm394_vm14, %v2159_v61, %v2174_v24  ;;  %v2213_v25 = vperm.slane %v2209_v62, %v2939_v58  ;;  %v2228_v10 = vrot.slane %v2207_v0, 4 }
 0x48f   :  { %v2160_v5 = vrot.slane %v2155_v41, 4  ;;  %v2163_v40 = vsel %vm394_vm14, %v2155_v41, %v2162_v20  ;;  %v2183_v1 = vperm.slane %v2175_v42, %v2950_v7  ;;  %v2217_v11 = vsel %vm394_vm14, %v2202_v56, %v2216_v12 }
 0x490   :  { %v2171_v55 = vperm.slane %v2163_v40, %v2950_v7  ;;  %v2173_v18 = vsel %vm394_vm14, %v2172_v13, %v2147_v52  ;;  %v2225_v38 = vperm.slane %v2217_v11, %v2950_v7  ;;  %v2229_v34 = vsel %vm394_vm14, %v2213_v25, %v2228_v10 }
 0x491   :  { %v2161_v14 = vsel %vm394_vm14, %v2160_v5, %v2143_v44  ;;  %v2179_v15 = vperm.slane %v2173_v18, %v2950_v7  ;;  %v2190_v32 = vrot.slane %v2183_v1, 4  ;;  %v2237_v51 = vperm.slane %v2229_v34, %v2950_v7  ;;  %v2467_v1 = vld [vmem:[#allocation11] sm:$0xff]  }
 0x492   :  { %v2167_v21 = vperm.slane %v2161_v14, %v2950_v7  ;;  %v2186_v60 = vrot.slane %v2171_v55, 4  ;;  %v2244_v26 = vrot.slane %v2225_v38, 4  ;;  %v2215_v23 = vsel %vm394_vm14, %v2214_v57, %v2196_v50 }
 0x493   :  { %v2188_v31 = vrot.slane %v2179_v15, 4  ;;  %v2191_v35 = vsel %vm394_vm14, 0.0, %v2190_v32  ;;  %v2257_v54 = vsel %vm394_vm14, %v2190_v32, %v2179_v15  ;;  %v2242_v30 = vrot.slane %v2237_v51, 4 }
 0x494   :  { %v2184_v47 = vrot.slane %v2167_v21, 4  ;;  %v2187_v2 = vsel %vm394_vm14, 0.0, %v2186_v60  ;;  %v2246_v9 = vsel %vm394_vm14, %v2186_v60, %v2167_v21  ;;  %v2262_v36 = vrot.slane %v2191_v35, 4  ;;  %v2536_v35 = vld [vmem:[%s3716_s9] ss:$0 sm:$0xff] }
 0x495   :  { %v2189_v6 = vsel %vm394_vm14, 0.0, %v2188_v31  ;;  %v2251_v3 = vrot.slane %v2187_v2, 4  ;;  %v2245_v19 = vsel %vm394_vm14, %v2237_v51, %v2244_v26  ;;  %v2243_v39 = vsel %vm394_vm14, %v2242_v30, %v2225_v38 }
 0x496   :  { %2318 = vrot.lane.b32.xlu0 %v2245_v19, %s2775_s8  ;;  %2310 = vrot.lane.b32.xlu2 %v2243_v39, %s2776_s23  ;;  %v2221_v29 = vperm.slane %v2215_v23, %v2950_v7  ;;  %v2226_v16 = vrot.slane %v2213_v25, 4  ;;  %v2185_v43 = vsel %vm394_vm14, 0.0, %v2184_v47  ;;  %v2250_v33 = vperm.slane %v2246_v9, %v2939_v58  ;;  %v2579_v47 = vld [vmem:[#allocation2] sm:$0xff] }
 0x497   :  { %v2252_v4 = vsel %vm394_vm14, %v2251_v3, %v2185_v43  ;;  %v2261_v45 = vperm.slane %v2257_v54, %v2939_v58  ;;  %v2263_v17 = vsel %vm394_vm14, %v2262_v36, %v2189_v6  ;;  %v2469_v11 = vunpack.c.h.bf16 %v2467_v1  ;;  %v2580_v6 = vld [vmem:[#allocation2 + $0x8] sm:$0xff] }
 0x498   :  { %v2227_v22 = vsel %vm394_vm14, %v2226_v16, %v2207_v0  ;;  %v2240_v49 = vrot.slane %v2221_v29, 4  ;;  %v2256_v50 = vperm.slane %v2252_v4, %v2939_v58  ;;  %v2267_v8 = vperm.slane %v2263_v17, %v2939_v58 }
 0x499   :  { %v2233_v59 = vperm.slane %v2227_v22, %v2950_v7  ;;  %v2270_v44 = vrot.slane %v2250_v33, 4  ;;  %v2282_v28 = vrot.slane %v2261_v45, 4  ;;  %v2468_v55 = vunpack.c.l.bf16 %v2467_v1 }
 0x49a   :  { %v2268_v52 = vrot.slane %v2256_v50, 4  ;;  %v2280_v53 = vrot.slane %v2267_v8, 4 }
 0x49b   :  { %v2238_v63 = vrot.slane %v2233_v59, 4  ;;  %v2241_v37 = vsel %vm394_vm14, %v2233_v59, %v2240_v49  ;;  %v2271_v20 = vsel %vm394_vm14, %v2256_v50, %v2270_v44  ;;  %v2283_v46 = vsel %vm394_vm14, %v2267_v8, %v2282_v28 }
 0x49c   :  { %2302 = vrot.lane.b32.xlu1 %v2241_v37, %s2761_s27  ;;  %v2279_v56 = vperm.slane %v2271_v20, %v2950_v7  ;;  %v2291_v48 = vperm.slane %v2283_v46, %v2950_v7  ;;  %v2269_v58 = vsel %vm394_vm14, %v2268_v52, %v2250_v33  ;;  %v2281_v24 = vsel %vm394_vm14, %v2280_v53, %v2261_v45 }
 0x49d   :  { %v2275_v27 = vperm.slane %v2269_v58, %v2950_v7  ;;  %v2287_v61 = vperm.slane %v2281_v24, %v2950_v7  ;;  %v2239_v0 = vsel %vm394_vm14, %v2238_v63, %v2221_v29  ;;  %v2477_v7 = vld [vmem:[#allocation11 + $0x8] sm:$0xff]  }
 0x49e   :  { %v2298_v41 = vrot.slane %v2279_v56, 4  ;;  %v2296_v62 = vrot.slane %v2291_v48, 4  ;;  %v2473_v5 = vunpack.c.h.bf16 %v2477_v7  ;;  %v2472_v40 = vunpack.c.l.bf16 %v2477_v7 }
 0x49f   :  { %v2292_v12 = vrot.slane %v2287_v61, 4  ;;  %v2294_v57 = vrot.slane %v2275_v27, 4 }
 0x4a0   :  { %v2299_v13 = vsel %vm394_vm14, %v2291_v48, %v2298_v41  ;;  %v2297_v42 = vsel %vm394_vm14, %v2296_v62, %v2279_v56  ;;  %2361 = vmatpush.msrb.mxu2 %v2473_v5 }
 0x4a1   :  { %2320 = vrot.lane.b32.xlu2 %v2299_v13, %s2775_s8  ;;  %2312 = vrot.lane.b32.xlu0 %v2297_v42, %s2776_s23  ;;  %v2295_v25 = vsel %vm394_vm14, %v2287_v61, %v2294_v57  ;;  %v2293_v10 = vsel %vm394_vm14, %v2292_v12, %v2275_v27 }
 0x4a2   :  { %2362 = vmatpush.msrb.mxu2 %v2472_v40 }
 0x4a4   :  { %2304 = vrot.lane.b32.xlu1 %v2295_v25, %s2761_s27  ;;  %2363 = vmatpush.msrb.mxu2 %v2469_v11 }
 0x4a6   :  { %2364 = vmatpush.msrb.mxu2 %v2468_v55 }
 0x4f0   :  { %v2311_v38 = vpop.permute.xlu2 %2310 }
 0x4fb   :  { %v2321_v26 = vpop.permute.xlu2 %2320 }
 0x508   :  { %v2319_v34 = vpop.permute.xlu0 %2318 }
 0x50e   :  { %v2303_v18 = vpop.permute.xlu1 %2302 }
 0x50f   :  { %v2324_v14 = vsel %vm1574_vm15, %v2239_v0, %v2303_v18 }
 0x510   :  { %v2326_v15 = vsel %vm1807_vm1, %v2324_v14, %v2311_v38 }
 0x511   :  { %v2329_v32 = vsel %vm2328_vm2, %v2326_v15, %v2319_v34 }
 0x512   :  { %2440 = vmatmul.msk.f32.vlgmr.msrb.gmra.mxu2 %vm142_vm0, %v2329_v32 }
 0x513   :  { %v2313_v21 = vpop.permute.xlu0 %2312 }
 0x516   :  { %v2305_v51 = vpop.permute.xlu1 %2304 }
 0x517   :  { %v2325_v60 = vsel %vm1574_vm15, %v2293_v10, %v2305_v51 }
 0x518   :  { %v2327_v23 = vsel %vm1807_vm1, %v2325_v60, %v2313_v21 }
 0x519   :  { %v2330_v31 = vsel %vm2328_vm2, %v2327_v23, %v2321_v26 }
 0x51a   :  { %2441 = vmatmul.msk.f32.gmra.mxu2 %vm142_vm0, %v2330_v31 }
 0x595   :  { %v2366_v54 = vpop.f32.mrf.mxu2 }
 0x596   :  { %v2367_v30 = vadd.f32 %v2536_v35, %v2366_v54 }
 0x598   :  { %v2372_v2 = vadd.f32 %v2579_v47, %v2367_v30 }
 0x59a   :  { %2374 = vst.msk [vmem:[#allocation13] sm:$0xff] %vm142_vm0, %v2372_v2 }
 0x59d   :  { %v2369_v9 = vpop.f32.mrf.mxu2 }
 0x59e   :  { %v2370_v36 = vadd.f32 %v2536_v35, %v2369_v9 }
 0x5a0   :  { %v2373_v3 = vadd.f32 %v2580_v6, %v2370_v36 }
 0x5a2   :  { %2375 = vst.msk [vmem:[#allocation13 + $0x8] sm:$0xff] %vm142_vm0, %v2373_v3 }
 0x5a3   :  { %2388 = dma.vmem_to_hbm [thread:$0]  %s2381_s25, 256, %s2383_s30, [#allocation4], %s2760_s26, %s2760_s26, %s2761_s27  }
 0x5a4   :  { %2757 = dma.done.wait [#allocation4], 256  }
 0x5a5   :  { %2758 = vsyncadd [#allocation4], 4294967040 }
 0x5a6   :  { %2393 = vsyncpa [#allocation3], 1 }
 0x5a7   :  { %2394 = vsyncpa [#allocation6], 1 }
 0x5a8   :  { %2395 = vsyncpa [#allocation9], 1 }
 0x5a9   :  { %2396 = vsyncpa [#allocation12], 1 }
 0x5aa   :  { %2397 = vsyncpa [#allocation4], 1 }

</bundles_post_ra>
